<compile_context>
chip_gen: v5e
topology: v5e:2x2
jax: 0.10.0
libtpu: 0.0.40
codegen_flags: <defaults>
</compile_context>

<pallas_src>
import jax
import jax.numpy as jnp
from jax import lax
from jax.experimental import pallas as pl
from jax.experimental.pallas import tpu as pltpu


def channel_attention_kernel(xp_ref, w1_ref, b1_ref, w2_ref, b2_ref,
                             wk_ref, cb_ref, o_ref, wcs_ref):
    # xp_ref : (1, H+2, W+2, C) bf16  zero-padded NHWC input, one batch element
    # w1_ref : (C, hidden) f32   b1_ref: (1, hidden) f32
    # w2_ref : (hidden, C) f32   b2_ref: (1, C) f32
    # wk_ref : (9, Co, C) f32    conv weights, tap k = ky*3 + kx
    # cb_ref : (Co, 1) f32       conv bias (column vector)
    # o_ref  : (1, Co, Ht*W) f32 lane-dense output slab for this H tile
    # wcs_ref: (9, Co, C) bf16   VMEM scratch: scale-folded weights, persists
    #                            across the H ("arbitrary") grid axis.
    _, Hp, Wp, C = xp_ref.shape
    H, W = Hp - 2, Wp - 2
    Co = o_ref.shape[1]
    HtW = o_ref.shape[2]
    Ht = HtW // W
    h = pl.program_id(1)

    # ---- once per batch element (first H tile): GAP -> SE MLP -> fold ----
    @pl.when(h == 0)
    def _():
        # Global average pool over the zero-padded block (padding adds 0);
        # accumulate in f32 even though the activations arrive as bf16.
        col_sum = jnp.sum(xp_ref[0].astype(jnp.float32), axis=0)          # (Wp, C)
        gap = jnp.sum(col_sum, axis=0, keepdims=True) * (1.0 / (H * W))   # (1, C)

        # Squeeze-excite MLP: Linear -> ReLU -> Linear -> Sigmoid (f32).
        hid = jnp.dot(gap, w1_ref[...],
                      preferred_element_type=jnp.float32) + b1_ref[...]
        hid = jnp.maximum(hid, 0.0)                                       # (1, hidden)
        s = jax.nn.sigmoid(
            jnp.dot(hid, w2_ref[...],
                    preferred_element_type=jnp.float32) + b2_ref[...])    # (1, C)

        # Fold the channel scale into the conv weights once (9*C*Co mults),
        # cast to bf16 and park in VMEM for reuse by every H tile.
        for k in range(9):
            wcs_ref[k] = (wk_ref[k] * s).astype(jnp.bfloat16)

    # ---- 3x3 conv for this H tile: nine accumulated bf16 MXU dots ----
    # (Co, C) . (Ht*W, C)^T per tap -> (Co, Ht*W): lane-dense accumulator
    # and a single unmasked 128-lane output store.
    row0 = pl.multiple_of(h * Ht, Ht)
    acc = jnp.zeros((Co, HtW), jnp.float32)
    for dy in range(3):
        for dx in range(3):
            k = dy * 3 + dx
            patch = xp_ref[0, pl.ds(row0 + dy, Ht), dx:dx + W, :]         # (Ht, W, C) bf16
            acc = acc + lax.dot_general(
                wcs_ref[k], patch.reshape(HtW, C),
                dimension_numbers=(((1,), (1,)), ((), ())),
                preferred_element_type=jnp.float32)                       # (Co, Ht*W)

    o_ref[0] = (acc + cb_ref[...]).astype(o_ref.dtype)


def channel_attention_block(x_nchw, params):
    """x_nchw: (B, C, H, W) float32 -> (B, Co, H, W) float32."""
    w1, b1 = params["w1"], params["b1"]
    w2, b2 = params["w2"], params["b2"]
    conv_w, conv_b = params["conv_w"], params["conv_b"]

    B, C, H, W = x_nchw.shape
    Co = conv_w.shape[0]
    hidden = w1.shape[1]

    # Layout glue (one fused XLA copy): NCHW -> NHWC, zero pad (pad=1), bf16.
    # At realistic sizes the producer should hand us NHWC/bf16 directly.
    x_nhwc = jnp.transpose(x_nchw, (0, 2, 3, 1))
    xp = jnp.pad(x_nhwc, ((0, 0), (1, 1), (1, 1), (0, 0))).astype(jnp.bfloat16)

    # conv weight (Co, C, 3, 3) -> (9, Co, C) with tap index k = ky*3 + kx,
    # so each per-tap weight slab is a fully aligned 2-D block in the kernel.
    wk = jnp.transpose(conv_w, (2, 3, 0, 1)).reshape(9, Co, C)
    b1_ = b1.reshape(1, hidden)
    b2_ = b2.reshape(1, C)
    cb = conv_b.reshape(Co, 1)

    # H tiling: smallest Ht that divides H and keeps Ht*W a multiple of 128
    # (lane-dense output stores). Gives B*NH pipeline steps, so each v7x
    # TensorCore sees >= 2 steps even at this toy size.
    Ht = H
    for cand in range(1, H + 1):
        if H % cand == 0 and (cand * W) % 128 == 0:
            Ht = cand
            break
    NH = H // Ht

    out = pl.pallas_call(
        channel_attention_kernel,
        out_shape=jax.ShapeDtypeStruct((B, Co, H * W), x_nchw.dtype),
        grid_spec=pltpu.PrefetchScalarGridSpec(
            num_scalar_prefetch=0,
            grid=(B, NH),
            in_specs=[
                # Full padded image per batch element; the block index only
                # depends on b, so Pallas skips the re-DMA across H tiles.
                pl.BlockSpec((1, H + 2, W + 2, C), lambda b, h: (b, 0, 0, 0)),
                pl.BlockSpec((C, hidden), lambda b, h: (0, 0)),
                pl.BlockSpec((1, hidden), lambda b, h: (0, 0)),
                pl.BlockSpec((hidden, C), lambda b, h: (0, 0)),
                pl.BlockSpec((1, C), lambda b, h: (0, 0)),
                pl.BlockSpec((9, Co, C), lambda b, h: (0, 0, 0)),
                pl.BlockSpec((Co, 1), lambda b, h: (0, 0)),
            ],
            # Row-major flattening of (H, W): H tile h owns the contiguous
            # lane range [h*Ht*W, (h+1)*Ht*W) of the (B, Co, H*W) slab.
            out_specs=pl.BlockSpec((1, Co, Ht * W), lambda b, h: (b, 0, h)),
            scratch_shapes=[pltpu.VMEM((9, Co, C), jnp.bfloat16)],
        ),
        compiler_params=pltpu.CompilerParams(
            # B: independent -> megacore-shardable. H: carries the folded
            # weight scratch from h==0 -> must stay sequential.
            dimension_semantics=("parallel", "arbitrary")),
    )(xp, w1, b1_, w2, b2_, wk, cb)

    # (B, Co, H*W) is already channel-major: just reshape to NCHW.
    return out.reshape(B, Co, H, W)


def init_params(key, in_ch, out_ch, ratio=16):
    hidden = int(in_ch / ratio)
    assert hidden >= 1, "in_ch must be >= ratio for the SE bottleneck"
    ks = jax.random.split(key, 6)
    return {
        # Linear weights stored pre-transposed as (in, out); same semantics as
        # PyTorch's x @ W.T with W of shape (out, in).
        "w1": jax.random.normal(ks[0], (in_ch, hidden), jnp.float32) * 0.1,
        "b1": jax.random.normal(ks[1], (hidden,), jnp.float32) * 0.1,
        "w2": jax.random.normal(ks[2], (hidden, in_ch), jnp.float32) * 0.1,
        "b2": jax.random.normal(ks[3], (in_ch,), jnp.float32) * 0.1,
        "conv_w": jax.random.normal(ks[4], (out_ch, in_ch, 3, 3), jnp.float32) * 0.1,
        "conv_b": jax.random.normal(ks[5], (out_ch,), jnp.float32) * 0.1,
    }


def reference_forward(x, p):
    """Pure-JAX reference reproducing the PyTorch forward exactly (f32)."""
    hi = lax.Precision.HIGHEST
    gap = jnp.mean(x, axis=(2, 3))                              # AdaptiveAvgPool2d(1)
    h = jax.nn.relu(jnp.dot(gap, p["w1"], precision=hi) + p["b1"])
    s = jax.nn.sigmoid(jnp.dot(h, p["w2"], precision=hi) + p["b2"])   # (B, C)
    xs = x * s[:, :, None, None]
    out = lax.conv_general_dilated(
        xs, p["conv_w"], window_strides=(1, 1), padding="SAME",
        dimension_numbers=("NCHW", "OIHW", "NCHW"), precision=hi)
    return out + p["conv_b"][None, :, None, None]


if __name__ == "__main__":
    B, in_ch, out_ch, H, W = 2, 64, 32, 16, 16   # hidden = in_ch // 16 = 4
    key = jax.random.PRNGKey(0)
    kx, kp = jax.random.split(key)
    x = jax.random.normal(kx, (B, in_ch, H, W), jnp.float32)
    params = init_params(kp, in_ch, out_ch, ratio=16)

    out = channel_attention_block(x, params)
    out = jax.block_until_ready(out)

    ref = reference_forward(x, params)
    if out.shape != (B, out_ch, H, W):
        raise AssertionError(f"bad output shape {out.shape}")
    # bf16 activations + bf16 scale-folded weights with f32 accumulation over
    # 9 taps * C = 576 terms: compare against the f32 reference at bf16-level
    # tolerance.
    if not jnp.allclose(out, ref, atol=2e-2, rtol=2e-2):
        err = jnp.max(jnp.abs(out - ref))
        raise AssertionError(f"Pallas kernel output does not match reference "
                             f"(max abs err {err})")

    print("KERNEL_OK")
</pallas_src>

<mosaic_0001>
module attributes {stable_mosaic.version = 11 : i64} {
  func.func @channel_attention_kernel(%arg0: i32, %arg1: i32, %arg2: memref<1x18x18x64xbf16, #tpu.memory_space<vmem>>, %arg3: memref<64x4xf32, #tpu.memory_space<vmem>>, %arg4: memref<1x4xf32, #tpu.memory_space<vmem>>, %arg5: memref<4x64xf32, #tpu.memory_space<vmem>>, %arg6: memref<1x64xf32, #tpu.memory_space<vmem>>, %arg7: memref<9x32x64xf32, #tpu.memory_space<vmem>>, %arg8: memref<32x1xf32, #tpu.memory_space<vmem>>, %arg9: memref<1x32x128xf32, #tpu.memory_space<vmem>>, %arg10: memref<9x32x64xbf16, #tpu.memory_space<vmem>>) attributes {dimension_semantics = [#tpu.dimension_semantics<parallel>, #tpu.dimension_semantics<arbitrary>], iteration_bounds = array<i64: 2, 2>, scalar_prefetch = 0 : i64, scratch_operands = 1 : i64, tpu.core_type = #tpu.core_type<tc>, window_params = [{transform_indices = @transform_0, window_bounds = array<i64: 1, 18, 18, 64>}, {pipeline_mode = #tpu.pipeline_mode<synchronous>, transform_indices = @transform_1, window_bounds = array<i64: 64, 4>}, {pipeline_mode = #tpu.pipeline_mode<synchronous>, transform_indices = @transform_2, window_bounds = array<i64: 1, 4>}, {pipeline_mode = #tpu.pipeline_mode<synchronous>, transform_indices = @transform_3, window_bounds = array<i64: 4, 64>}, {pipeline_mode = #tpu.pipeline_mode<synchronous>, transform_indices = @transform_4, window_bounds = array<i64: 1, 64>}, {pipeline_mode = #tpu.pipeline_mode<synchronous>, transform_indices = @transform_5, window_bounds = array<i64: 9, 32, 64>}, {pipeline_mode = #tpu.pipeline_mode<synchronous>, transform_indices = @transform_6, window_bounds = array<i64: 32, 1>}, {transform_indices = @transform_7, window_bounds = array<i64: 1, 32, 128>}]} {
    %c0_i32 = arith.constant 0 : i32
    %0 = arith.cmpi eq, %arg1, %c0_i32 : i32
    %1 = arith.extui %0 : i1 to i32
    %c0_i32_0 = arith.constant 0 : i32
    %2 = arith.cmpi ne, %1, %c0_i32_0 : i32
    scf.if %2 {
      %c0_67 = arith.constant 0 : index
      %c0_68 = arith.constant 0 : index
      %c0_69 = arith.constant 0 : index
      %c0_70 = arith.constant 0 : index
      %93 = vector.load %arg2[%c0_67, %c0_68, %c0_69, %c0_70] : memref<1x18x18x64xbf16, #tpu.memory_space<vmem>>, vector<1x18x18x64xbf16>
      %94 = vector.shape_cast %93 : vector<1x18x18x64xbf16> to vector<18x18x64xbf16>
      %95 = arith.extf %94 : vector<18x18x64xbf16> to vector<18x18x64xf32>
      %cst_71 = arith.constant dense<0.000000e+00> : vector<18x64xf32>
      %96 = vector.multi_reduction <add>, %95, %cst_71 [0] : vector<18x18x64xf32> to vector<18x64xf32>
      %cst_72 = arith.constant dense<0.000000e+00> : vector<64xf32>
      %97 = vector.multi_reduction <add>, %96, %cst_72 [0] : vector<18x64xf32> to vector<64xf32>
      %98 = vector.shape_cast %97 : vector<64xf32> to vector<1x64xf32>
      %cst_73 = arith.constant 3.906250e-03 : f32
      %99 = vector.broadcast %cst_73 : f32 to vector<1x64xf32>
      %100 = arith.mulf %98, %99 : vector<1x64xf32>
      %c0_74 = arith.constant 0 : index
      %c0_75 = arith.constant 0 : index
      %101 = vector.load %arg3[%c0_74, %c0_75] : memref<64x4xf32, #tpu.memory_space<vmem>>, vector<64x4xf32>
      %cst_76 = arith.constant dense<0.000000e+00> : vector<1x4xf32>
      %102 = tpu.matmul %100, %101, %cst_76 {dimension_numbers = #tpu.dot_dimension_numbers<[1], [0], [0], [1], [0, 0, 1, 1], [], []>} : vector<1x64xf32>, vector<64x4xf32>, vector<1x4xf32> -> vector<1x4xf32>
      %c0_77 = arith.constant 0 : index
      %c0_78 = arith.constant 0 : index
      %103 = vector.load %arg4[%c0_77, %c0_78] : memref<1x4xf32, #tpu.memory_space<vmem>>, vector<1x4xf32>
      %104 = arith.addf %102, %103 : vector<1x4xf32>
      %cst_79 = arith.constant 0.000000e+00 : f32
      %105 = vector.broadcast %cst_79 : f32 to vector<1x4xf32>
      %106 = arith.maximumf %104, %105 : vector<1x4xf32>
      %c0_80 = arith.constant 0 : index
      %c0_81 = arith.constant 0 : index
      %107 = vector.load %arg5[%c0_80, %c0_81] : memref<4x64xf32, #tpu.memory_space<vmem>>, vector<4x64xf32>
      %cst_82 = arith.constant dense<0.000000e+00> : vector<1x64xf32>
      %108 = tpu.matmul %106, %107, %cst_82 {dimension_numbers = #tpu.dot_dimension_numbers<[1], [0], [0], [1], [0, 0, 1, 1], [], []>} : vector<1x4xf32>, vector<4x64xf32>, vector<1x64xf32> -> vector<1x64xf32>
      %c0_83 = arith.constant 0 : index
      %c0_84 = arith.constant 0 : index
      %109 = vector.load %arg6[%c0_83, %c0_84] : memref<1x64xf32, #tpu.memory_space<vmem>>, vector<1x64xf32>
      %110 = arith.addf %108, %109 : vector<1x64xf32>
      %111 = arith.negf %110 : vector<1x64xf32>
      %112 = math.exp %111 : vector<1x64xf32>
      %cst_85 = arith.constant 1.000000e+00 : f32
      %113 = vector.broadcast %cst_85 : f32 to vector<1x64xf32>
      %114 = arith.addf %113, %112 : vector<1x64xf32>
      %115 = arith.divf %113, %114 : vector<1x64xf32>
      %c0_86 = arith.constant 0 : index
      %c0_87 = arith.constant 0 : index
      %c0_88 = arith.constant 0 : index
      %116 = vector.load %arg7[%c0_86, %c0_87, %c0_88] : memref<9x32x64xf32, #tpu.memory_space<vmem>>, vector<1x32x64xf32>
      %117 = vector.shape_cast %116 : vector<1x32x64xf32> to vector<32x64xf32>
      %118 = vector.broadcast %115 : vector<1x64xf32> to vector<32x64xf32>
      %119 = arith.mulf %117, %118 : vector<32x64xf32>
      %120 = arith.truncf %119 : vector<32x64xf32> to vector<32x64xbf16>
      %c0_89 = arith.constant 0 : index
      %c0_90 = arith.constant 0 : index
      %c0_91 = arith.constant 0 : index
      %121 = vector.load %arg10[%c0_89, %c0_90, %c0_91] : memref<9x32x64xbf16, #tpu.memory_space<vmem>>, vector<1x32x64xbf16>
      %122 = vector.shape_cast %121 : vector<1x32x64xbf16> to vector<32x64xbf16>
      %123 = vector.shape_cast %120 : vector<32x64xbf16> to vector<1x32x64xbf16>
      tpu.vector_store %arg10[%c0_89, %c0_90, %c0_91], %123 {strides = array<i32>} : memref<9x32x64xbf16, #tpu.memory_space<vmem>>, vector<1x32x64xbf16>,
      %c1_92 = arith.constant 1 : index
      %c0_93 = arith.constant 0 : index
      %c0_94 = arith.constant 0 : index
      %124 = vector.load %arg7[%c1_92, %c0_93, %c0_94] : memref<9x32x64xf32, #tpu.memory_space<vmem>>, vector<1x32x64xf32>
      %125 = vector.shape_cast %124 : vector<1x32x64xf32> to vector<32x64xf32>
      %126 = vector.broadcast %115 : vector<1x64xf32> to vector<32x64xf32>
      %127 = arith.mulf %125, %126 : vector<32x64xf32>
      %128 = arith.truncf %127 : vector<32x64xf32> to vector<32x64xbf16>
      %c1_95 = arith.constant 1 : index
      %c0_96 = arith.constant 0 : index
      %c0_97 = arith.constant 0 : index
      %129 = vector.load %arg10[%c1_95, %c0_96, %c0_97] : memref<9x32x64xbf16, #tpu.memory_space<vmem>>, vector<1x32x64xbf16>
      %130 = vector.shape_cast %129 : vector<1x32x64xbf16> to vector<32x64xbf16>
      %131 = vector.shape_cast %128 : vector<32x64xbf16> to vector<1x32x64xbf16>
      tpu.vector_store %arg10[%c1_95, %c0_96, %c0_97], %131 {strides = array<i32>} : memref<9x32x64xbf16, #tpu.memory_space<vmem>>, vector<1x32x64xbf16>,
      %c2_98 = arith.constant 2 : index
      %c0_99 = arith.constant 0 : index
      %c0_100 = arith.constant 0 : index
      %132 = vector.load %arg7[%c2_98, %c0_99, %c0_100] : memref<9x32x64xf32, #tpu.memory_space<vmem>>, vector<1x32x64xf32>
      %133 = vector.shape_cast %132 : vector<1x32x64xf32> to vector<32x64xf32>
      %134 = vector.broadcast %115 : vector<1x64xf32> to vector<32x64xf32>
      %135 = arith.mulf %133, %134 : vector<32x64xf32>
      %136 = arith.truncf %135 : vector<32x64xf32> to vector<32x64xbf16>
      %c2_101 = arith.constant 2 : index
      %c0_102 = arith.constant 0 : index
      %c0_103 = arith.constant 0 : index
      %137 = vector.load %arg10[%c2_101, %c0_102, %c0_103] : memref<9x32x64xbf16, #tpu.memory_space<vmem>>, vector<1x32x64xbf16>
      %138 = vector.shape_cast %137 : vector<1x32x64xbf16> to vector<32x64xbf16>
      %139 = vector.shape_cast %136 : vector<32x64xbf16> to vector<1x32x64xbf16>
      tpu.vector_store %arg10[%c2_101, %c0_102, %c0_103], %139 {strides = array<i32>} : memref<9x32x64xbf16, #tpu.memory_space<vmem>>, vector<1x32x64xbf16>,
      %c3_104 = arith.constant 3 : index
      %c0_105 = arith.constant 0 : index
      %c0_106 = arith.constant 0 : index
      %140 = vector.load %arg7[%c3_104, %c0_105, %c0_106] : memref<9x32x64xf32, #tpu.memory_space<vmem>>, vector<1x32x64xf32>
      %141 = vector.shape_cast %140 : vector<1x32x64xf32> to vector<32x64xf32>
      %142 = vector.broadcast %115 : vector<1x64xf32> to vector<32x64xf32>
      %143 = arith.mulf %141, %142 : vector<32x64xf32>
      %144 = arith.truncf %143 : vector<32x64xf32> to vector<32x64xbf16>
      %c3_107 = arith.constant 3 : index
      %c0_108 = arith.constant 0 : index
      %c0_109 = arith.constant 0 : index
      %145 = vector.load %arg10[%c3_107, %c0_108, %c0_109] : memref<9x32x64xbf16, #tpu.memory_space<vmem>>, vector<1x32x64xbf16>
      %146 = vector.shape_cast %145 : vector<1x32x64xbf16> to vector<32x64xbf16>
      %147 = vector.shape_cast %144 : vector<32x64xbf16> to vector<1x32x64xbf16>
      tpu.vector_store %arg10[%c3_107, %c0_108, %c0_109], %147 {strides = array<i32>} : memref<9x32x64xbf16, #tpu.memory_space<vmem>>, vector<1x32x64xbf16>,
      %c4_110 = arith.constant 4 : index
      %c0_111 = arith.constant 0 : index
      %c0_112 = arith.constant 0 : index
      %148 = vector.load %arg7[%c4_110, %c0_111, %c0_112] : memref<9x32x64xf32, #tpu.memory_space<vmem>>, vector<1x32x64xf32>
      %149 = vector.shape_cast %148 : vector<1x32x64xf32> to vector<32x64xf32>
      %150 = vector.broadcast %115 : vector<1x64xf32> to vector<32x64xf32>
      %151 = arith.mulf %149, %150 : vector<32x64xf32>
      %152 = arith.truncf %151 : vector<32x64xf32> to vector<32x64xbf16>
      %c4_113 = arith.constant 4 : index
      %c0_114 = arith.constant 0 : index
      %c0_115 = arith.constant 0 : index
      %153 = vector.load %arg10[%c4_113, %c0_114, %c0_115] : memref<9x32x64xbf16, #tpu.memory_space<vmem>>, vector<1x32x64xbf16>
      %154 = vector.shape_cast %153 : vector<1x32x64xbf16> to vector<32x64xbf16>
      %155 = vector.shape_cast %152 : vector<32x64xbf16> to vector<1x32x64xbf16>
      tpu.vector_store %arg10[%c4_113, %c0_114, %c0_115], %155 {strides = array<i32>} : memref<9x32x64xbf16, #tpu.memory_space<vmem>>, vector<1x32x64xbf16>,
      %c5_116 = arith.constant 5 : index
      %c0_117 = arith.constant 0 : index
      %c0_118 = arith.constant 0 : index
      %156 = vector.load %arg7[%c5_116, %c0_117, %c0_118] : memref<9x32x64xf32, #tpu.memory_space<vmem>>, vector<1x32x64xf32>
      %157 = vector.shape_cast %156 : vector<1x32x64xf32> to vector<32x64xf32>
      %158 = vector.broadcast %115 : vector<1x64xf32> to vector<32x64xf32>
      %159 = arith.mulf %157, %158 : vector<32x64xf32>
      %160 = arith.truncf %159 : vector<32x64xf32> to vector<32x64xbf16>
      %c5_119 = arith.constant 5 : index
      %c0_120 = arith.constant 0 : index
      %c0_121 = arith.constant 0 : index
      %161 = vector.load %arg10[%c5_119, %c0_120, %c0_121] : memref<9x32x64xbf16, #tpu.memory_space<vmem>>, vector<1x32x64xbf16>
      %162 = vector.shape_cast %161 : vector<1x32x64xbf16> to vector<32x64xbf16>
      %163 = vector.shape_cast %160 : vector<32x64xbf16> to vector<1x32x64xbf16>
      tpu.vector_store %arg10[%c5_119, %c0_120, %c0_121], %163 {strides = array<i32>} : memref<9x32x64xbf16, #tpu.memory_space<vmem>>, vector<1x32x64xbf16>,
      %c6_122 = arith.constant 6 : index
      %c0_123 = arith.constant 0 : index
      %c0_124 = arith.constant 0 : index
      %164 = vector.load %arg7[%c6_122, %c0_123, %c0_124] : memref<9x32x64xf32, #tpu.memory_space<vmem>>, vector<1x32x64xf32>
      %165 = vector.shape_cast %164 : vector<1x32x64xf32> to vector<32x64xf32>
      %166 = vector.broadcast %115 : vector<1x64xf32> to vector<32x64xf32>
      %167 = arith.mulf %165, %166 : vector<32x64xf32>
      %168 = arith.truncf %167 : vector<32x64xf32> to vector<32x64xbf16>
      %c6_125 = arith.constant 6 : index
      %c0_126 = arith.constant 0 : index
      %c0_127 = arith.constant 0 : index
      %169 = vector.load %arg10[%c6_125, %c0_126, %c0_127] : memref<9x32x64xbf16, #tpu.memory_space<vmem>>, vector<1x32x64xbf16>
      %170 = vector.shape_cast %169 : vector<1x32x64xbf16> to vector<32x64xbf16>
      %171 = vector.shape_cast %168 : vector<32x64xbf16> to vector<1x32x64xbf16>
      tpu.vector_store %arg10[%c6_125, %c0_126, %c0_127], %171 {strides = array<i32>} : memref<9x32x64xbf16, #tpu.memory_space<vmem>>, vector<1x32x64xbf16>,
      %c7_128 = arith.constant 7 : index
      %c0_129 = arith.constant 0 : index
      %c0_130 = arith.constant 0 : index
      %172 = vector.load %arg7[%c7_128, %c0_129, %c0_130] : memref<9x32x64xf32, #tpu.memory_space<vmem>>, vector<1x32x64xf32>
      %173 = vector.shape_cast %172 : vector<1x32x64xf32> to vector<32x64xf32>
      %174 = vector.broadcast %115 : vector<1x64xf32> to vector<32x64xf32>
      %175 = arith.mulf %173, %174 : vector<32x64xf32>
      %176 = arith.truncf %175 : vector<32x64xf32> to vector<32x64xbf16>
      %c7_131 = arith.constant 7 : index
      %c0_132 = arith.constant 0 : index
      %c0_133 = arith.constant 0 : index
      %177 = vector.load %arg10[%c7_131, %c0_132, %c0_133] : memref<9x32x64xbf16, #tpu.memory_space<vmem>>, vector<1x32x64xbf16>
      %178 = vector.shape_cast %177 : vector<1x32x64xbf16> to vector<32x64xbf16>
      %179 = vector.shape_cast %176 : vector<32x64xbf16> to vector<1x32x64xbf16>
      tpu.vector_store %arg10[%c7_131, %c0_132, %c0_133], %179 {strides = array<i32>} : memref<9x32x64xbf16, #tpu.memory_space<vmem>>, vector<1x32x64xbf16>,
      %c8_134 = arith.constant 8 : index
      %c0_135 = arith.constant 0 : index
      %c0_136 = arith.constant 0 : index
      %180 = vector.load %arg7[%c8_134, %c0_135, %c0_136] : memref<9x32x64xf32, #tpu.memory_space<vmem>>, vector<1x32x64xf32>
      %181 = vector.shape_cast %180 : vector<1x32x64xf32> to vector<32x64xf32>
      %182 = vector.broadcast %115 : vector<1x64xf32> to vector<32x64xf32>
      %183 = arith.mulf %181, %182 : vector<32x64xf32>
      %184 = arith.truncf %183 : vector<32x64xf32> to vector<32x64xbf16>
      %c8_137 = arith.constant 8 : index
      %c0_138 = arith.constant 0 : index
      %c0_139 = arith.constant 0 : index
      %185 = vector.load %arg10[%c8_137, %c0_138, %c0_139] : memref<9x32x64xbf16, #tpu.memory_space<vmem>>, vector<1x32x64xbf16>
      %186 = vector.shape_cast %185 : vector<1x32x64xbf16> to vector<32x64xbf16>
      %187 = vector.shape_cast %184 : vector<32x64xbf16> to vector<1x32x64xbf16>
      tpu.vector_store %arg10[%c8_137, %c0_138, %c0_139], %187 {strides = array<i32>} : memref<9x32x64xbf16, #tpu.memory_space<vmem>>, vector<1x32x64xbf16>,
    } else {
    }
    %c8_i32 = arith.constant 8 : i32
    %3 = arith.muli %arg1, %c8_i32 : i32
    %4 = tpu.assume_multiple %3, 8 : i32
    %cst = arith.constant 0.000000e+00 : f32
    %5 = vector.broadcast %cst : f32 to vector<32x128xf32>
    %c0_i32_1 = arith.constant 0 : i32
    %6 = arith.addi %4, %c0_i32_1 : i32
    %c0 = arith.constant 0 : index
    %7 = arith.index_cast %6 : i32 to index
    %c0_2 = arith.constant 0 : index
    %c0_3 = arith.constant 0 : index
    %8 = vector.load %arg2[%c0, %7, %c0_2, %c0_3] : memref<1x18x18x64xbf16, #tpu.memory_space<vmem>>, vector<1x8x16x64xbf16>
    %9 = vector.shape_cast %8 : vector<1x8x16x64xbf16> to vector<8x16x64xbf16>
    %c0_4 = arith.constant 0 : index
    %c0_5 = arith.constant 0 : index
    %c0_6 = arith.constant 0 : index
    %10 = vector.load %arg10[%c0_4, %c0_5, %c0_6] : memref<9x32x64xbf16, #tpu.memory_space<vmem>>, vector<1x32x64xbf16>
    %11 = vector.shape_cast %10 : vector<1x32x64xbf16> to vector<32x64xbf16>
    %12 = vector.shape_cast %9 : vector<8x16x64xbf16> to vector<128x64xbf16>
    %cst_7 = arith.constant dense<0.000000e+00> : vector<32x128xf32>
    %13 = tpu.matmul %11, %12, %cst_7 {dimension_numbers = #tpu.dot_dimension_numbers<[1], [1], [0], [0], [0, 0, 1, 0], [], []>} : vector<32x64xbf16>, vector<128x64xbf16>, vector<32x128xf32> -> vector<32x128xf32>
    %14 = arith.addf %5, %13 : vector<32x128xf32>
    %c0_i32_8 = arith.constant 0 : i32
    %15 = arith.addi %4, %c0_i32_8 : i32
    %c0_9 = arith.constant 0 : index
    %16 = arith.index_cast %15 : i32 to index
    %c1 = arith.constant 1 : index
    %c0_10 = arith.constant 0 : index
    %17 = vector.load %arg2[%c0_9, %16, %c1, %c0_10] : memref<1x18x18x64xbf16, #tpu.memory_space<vmem>>, vector<1x8x16x64xbf16>
    %18 = vector.shape_cast %17 : vector<1x8x16x64xbf16> to vector<8x16x64xbf16>
    %c1_11 = arith.constant 1 : index
    %c0_12 = arith.constant 0 : index
    %c0_13 = arith.constant 0 : index
    %19 = vector.load %arg10[%c1_11, %c0_12, %c0_13] : memref<9x32x64xbf16, #tpu.memory_space<vmem>>, vector<1x32x64xbf16>
    %20 = vector.shape_cast %19 : vector<1x32x64xbf16> to vector<32x64xbf16>
    %21 = vector.shape_cast %18 : vector<8x16x64xbf16> to vector<128x64xbf16>
    %cst_14 = arith.constant dense<0.000000e+00> : vector<32x128xf32>
    %22 = tpu.matmul %20, %21, %cst_14 {dimension_numbers = #tpu.dot_dimension_numbers<[1], [1], [0], [0], [0, 0, 1, 0], [], []>} : vector<32x64xbf16>, vector<128x64xbf16>, vector<32x128xf32> -> vector<32x128xf32>
    %23 = arith.addf %14, %22 : vector<32x128xf32>
    %c0_i32_15 = arith.constant 0 : i32
    %24 = arith.addi %4, %c0_i32_15 : i32
    %c0_16 = arith.constant 0 : index
    %25 = arith.index_cast %24 : i32 to index
    %c2 = arith.constant 2 : index
    %c0_17 = arith.constant 0 : index
    %26 = vector.load %arg2[%c0_16, %25, %c2, %c0_17] : memref<1x18x18x64xbf16, #tpu.memory_space<vmem>>, vector<1x8x16x64xbf16>
    %27 = vector.shape_cast %26 : vector<1x8x16x64xbf16> to vector<8x16x64xbf16>
    %c2_18 = arith.constant 2 : index
    %c0_19 = arith.constant 0 : index
    %c0_20 = arith.constant 0 : index
    %28 = vector.load %arg10[%c2_18, %c0_19, %c0_20] : memref<9x32x64xbf16, #tpu.memory_space<vmem>>, vector<1x32x64xbf16>
    %29 = vector.shape_cast %28 : vector<1x32x64xbf16> to vector<32x64xbf16>
    %30 = vector.shape_cast %27 : vector<8x16x64xbf16> to vector<128x64xbf16>
    %cst_21 = arith.constant dense<0.000000e+00> : vector<32x128xf32>
    %31 = tpu.matmul %29, %30, %cst_21 {dimension_numbers = #tpu.dot_dimension_numbers<[1], [1], [0], [0], [0, 0, 1, 0], [], []>} : vector<32x64xbf16>, vector<128x64xbf16>, vector<32x128xf32> -> vector<32x128xf32>
    %32 = arith.addf %23, %31 : vector<32x128xf32>
    %c1_i32 = arith.constant 1 : i32
    %33 = arith.addi %4, %c1_i32 : i32
    %c0_22 = arith.constant 0 : index
    %34 = arith.index_cast %33 : i32 to index
    %c0_23 = arith.constant 0 : index
    %c0_24 = arith.constant 0 : index
    %35 = vector.load %arg2[%c0_22, %34, %c0_23, %c0_24] : memref<1x18x18x64xbf16, #tpu.memory_space<vmem>>, vector<1x8x16x64xbf16>
    %36 = vector.shape_cast %35 : vector<1x8x16x64xbf16> to vector<8x16x64xbf16>
    %c3 = arith.constant 3 : index
    %c0_25 = arith.constant 0 : index
    %c0_26 = arith.constant 0 : index
    %37 = vector.load %arg10[%c3, %c0_25, %c0_26] : memref<9x32x64xbf16, #tpu.memory_space<vmem>>, vector<1x32x64xbf16>
    %38 = vector.shape_cast %37 : vector<1x32x64xbf16> to vector<32x64xbf16>
    %39 = vector.shape_cast %36 : vector<8x16x64xbf16> to vector<128x64xbf16>
    %cst_27 = arith.constant dense<0.000000e+00> : vector<32x128xf32>
    %40 = tpu.matmul %38, %39, %cst_27 {dimension_numbers = #tpu.dot_dimension_numbers<[1], [1], [0], [0], [0, 0, 1, 0], [], []>} : vector<32x64xbf16>, vector<128x64xbf16>, vector<32x128xf32> -> vector<32x128xf32>
    %41 = arith.addf %32, %40 : vector<32x128xf32>
    %c1_i32_28 = arith.constant 1 : i32
    %42 = arith.addi %4, %c1_i32_28 : i32
    %c0_29 = arith.constant 0 : index
    %43 = arith.index_cast %42 : i32 to index
    %c1_30 = arith.constant 1 : index
    %c0_31 = arith.constant 0 : index
    %44 = vector.load %arg2[%c0_29, %43, %c1_30, %c0_31] : memref<1x18x18x64xbf16, #tpu.memory_space<vmem>>, vector<1x8x16x64xbf16>
    %45 = vector.shape_cast %44 : vector<1x8x16x64xbf16> to vector<8x16x64xbf16>
    %c4 = arith.constant 4 : index
    %c0_32 = arith.constant 0 : index
    %c0_33 = arith.constant 0 : index
    %46 = vector.load %arg10[%c4, %c0_32, %c0_33] : memref<9x32x64xbf16, #tpu.memory_space<vmem>>, vector<1x32x64xbf16>
    %47 = vector.shape_cast %46 : vector<1x32x64xbf16> to vector<32x64xbf16>
    %48 = vector.shape_cast %45 : vector<8x16x64xbf16> to vector<128x64xbf16>
    %cst_34 = arith.constant dense<0.000000e+00> : vector<32x128xf32>
    %49 = tpu.matmul %47, %48, %cst_34 {dimension_numbers = #tpu.dot_dimension_numbers<[1], [1], [0], [0], [0, 0, 1, 0], [], []>} : vector<32x64xbf16>, vector<128x64xbf16>, vector<32x128xf32> -> vector<32x128xf32>
    %50 = arith.addf %41, %49 : vector<32x128xf32>
    %c1_i32_35 = arith.constant 1 : i32
    %51 = arith.addi %4, %c1_i32_35 : i32
    %c0_36 = arith.constant 0 : index
    %52 = arith.index_cast %51 : i32 to index
    %c2_37 = arith.constant 2 : index
    %c0_38 = arith.constant 0 : index
    %53 = vector.load %arg2[%c0_36, %52, %c2_37, %c0_38] : memref<1x18x18x64xbf16, #tpu.memory_space<vmem>>, vector<1x8x16x64xbf16>
    %54 = vector.shape_cast %53 : vector<1x8x16x64xbf16> to vector<8x16x64xbf16>
    %c5 = arith.constant 5 : index
    %c0_39 = arith.constant 0 : index
    %c0_40 = arith.constant 0 : index
    %55 = vector.load %arg10[%c5, %c0_39, %c0_40] : memref<9x32x64xbf16, #tpu.memory_space<vmem>>, vector<1x32x64xbf16>
    %56 = vector.shape_cast %55 : vector<1x32x64xbf16> to vector<32x64xbf16>
    %57 = vector.shape_cast %54 : vector<8x16x64xbf16> to vector<128x64xbf16>
    %cst_41 = arith.constant dense<0.000000e+00> : vector<32x128xf32>
    %58 = tpu.matmul %56, %57, %cst_41 {dimension_numbers = #tpu.dot_dimension_numbers<[1], [1], [0], [0], [0, 0, 1, 0], [], []>} : vector<32x64xbf16>, vector<128x64xbf16>, vector<32x128xf32> -> vector<32x128xf32>
    %59 = arith.addf %50, %58 : vector<32x128xf32>
    %c2_i32 = arith.constant 2 : i32
    %60 = arith.addi %4, %c2_i32 : i32
    %c0_42 = arith.constant 0 : index
    %61 = arith.index_cast %60 : i32 to index
    %c0_43 = arith.constant 0 : index
    %c0_44 = arith.constant 0 : index
    %62 = vector.load %arg2[%c0_42, %61, %c0_43, %c0_44] : memref<1x18x18x64xbf16, #tpu.memory_space<vmem>>, vector<1x8x16x64xbf16>
    %63 = vector.shape_cast %62 : vector<1x8x16x64xbf16> to vector<8x16x64xbf16>
    %c6 = arith.constant 6 : index
    %c0_45 = arith.constant 0 : index
    %c0_46 = arith.constant 0 : index
    %64 = vector.load %arg10[%c6, %c0_45, %c0_46] : memref<9x32x64xbf16, #tpu.memory_space<vmem>>, vector<1x32x64xbf16>
    %65 = vector.shape_cast %64 : vector<1x32x64xbf16> to vector<32x64xbf16>
    %66 = vector.shape_cast %63 : vector<8x16x64xbf16> to vector<128x64xbf16>
    %cst_47 = arith.constant dense<0.000000e+00> : vector<32x128xf32>
    %67 = tpu.matmul %65, %66, %cst_47 {dimension_numbers = #tpu.dot_dimension_numbers<[1], [1], [0], [0], [0, 0, 1, 0], [], []>} : vector<32x64xbf16>, vector<128x64xbf16>, vector<32x128xf32> -> vector<32x128xf32>
    %68 = arith.addf %59, %67 : vector<32x128xf32>
    %c2_i32_48 = arith.constant 2 : i32
    %69 = arith.addi %4, %c2_i32_48 : i32
    %c0_49 = arith.constant 0 : index
    %70 = arith.index_cast %69 : i32 to index
    %c1_50 = arith.constant 1 : index
    %c0_51 = arith.constant 0 : index
    %71 = vector.load %arg2[%c0_49, %70, %c1_50, %c0_51] : memref<1x18x18x64xbf16, #tpu.memory_space<vmem>>, vector<1x8x16x64xbf16>
    %72 = vector.shape_cast %71 : vector<1x8x16x64xbf16> to vector<8x16x64xbf16>
    %c7 = arith.constant 7 : index
    %c0_52 = arith.constant 0 : index
    %c0_53 = arith.constant 0 : index
    %73 = vector.load %arg10[%c7, %c0_52, %c0_53] : memref<9x32x64xbf16, #tpu.memory_space<vmem>>, vector<1x32x64xbf16>
    %74 = vector.shape_cast %73 : vector<1x32x64xbf16> to vector<32x64xbf16>
    %75 = vector.shape_cast %72 : vector<8x16x64xbf16> to vector<128x64xbf16>
    %cst_54 = arith.constant dense<0.000000e+00> : vector<32x128xf32>
    %76 = tpu.matmul %74, %75, %cst_54 {dimension_numbers = #tpu.dot_dimension_numbers<[1], [1], [0], [0], [0, 0, 1, 0], [], []>} : vector<32x64xbf16>, vector<128x64xbf16>, vector<32x128xf32> -> vector<32x128xf32>
    %77 = arith.addf %68, %76 : vector<32x128xf32>
    %c2_i32_55 = arith.constant 2 : i32
    %78 = arith.addi %4, %c2_i32_55 : i32
    %c0_56 = arith.constant 0 : index
    %79 = arith.index_cast %78 : i32 to index
    %c2_57 = arith.constant 2 : index
    %c0_58 = arith.constant 0 : index
    %80 = vector.load %arg2[%c0_56, %79, %c2_57, %c0_58] : memref<1x18x18x64xbf16, #tpu.memory_space<vmem>>, vector<1x8x16x64xbf16>
    %81 = vector.shape_cast %80 : vector<1x8x16x64xbf16> to vector<8x16x64xbf16>
    %c8 = arith.constant 8 : index
    %c0_59 = arith.constant 0 : index
    %c0_60 = arith.constant 0 : index
    %82 = vector.load %arg10[%c8, %c0_59, %c0_60] : memref<9x32x64xbf16, #tpu.memory_space<vmem>>, vector<1x32x64xbf16>
    %83 = vector.shape_cast %82 : vector<1x32x64xbf16> to vector<32x64xbf16>
    %84 = vector.shape_cast %81 : vector<8x16x64xbf16> to vector<128x64xbf16>
    %cst_61 = arith.constant dense<0.000000e+00> : vector<32x128xf32>
    %85 = tpu.matmul %83, %84, %cst_61 {dimension_numbers = #tpu.dot_dimension_numbers<[1], [1], [0], [0], [0, 0, 1, 0], [], []>} : vector<32x64xbf16>, vector<128x64xbf16>, vector<32x128xf32> -> vector<32x128xf32>
    %86 = arith.addf %77, %85 : vector<32x128xf32>
    %c0_62 = arith.constant 0 : index
    %c0_63 = arith.constant 0 : index
    %87 = vector.load %arg8[%c0_62, %c0_63] : memref<32x1xf32, #tpu.memory_space<vmem>>, vector<32x1xf32>
    %88 = vector.broadcast %87 : vector<32x1xf32> to vector<32x128xf32>
    %89 = arith.addf %86, %88 : vector<32x128xf32>
    %c0_64 = arith.constant 0 : index
    %c0_65 = arith.constant 0 : index
    %c0_66 = arith.constant 0 : index
    %90 = vector.load %arg9[%c0_64, %c0_65, %c0_66] : memref<1x32x128xf32, #tpu.memory_space<vmem>>, vector<1x32x128xf32>
    %91 = vector.shape_cast %90 : vector<1x32x128xf32> to vector<32x128xf32>
    %92 = vector.shape_cast %89 : vector<32x128xf32> to vector<1x32x128xf32>
    tpu.vector_store %arg9[%c0_64, %c0_65, %c0_66], %92 {strides = array<i32>} : memref<1x32x128xf32, #tpu.memory_space<vmem>>, vector<1x32x128xf32>,
    return
  }
  func.func @transform_0(%arg0: i32, %arg1: i32) -> (i32, i32, i32, i32) {
    %c0_i32 = arith.constant 0 : i32
    %c0_i32_0 = arith.constant 0 : i32
    %c0_i32_1 = arith.constant 0 : i32
    %c0_i32_2 = arith.constant 0 : i32
    return %arg0, %c0_i32, %c0_i32_0, %c0_i32_1 : i32, i32, i32, i32
  }
  func.func @transform_1(%arg0: i32, %arg1: i32) -> (i32, i32) {
    %c0_i32 = arith.constant 0 : i32
    %c0_i32_0 = arith.constant 0 : i32
    %c0_i32_1 = arith.constant 0 : i32
    return %c0_i32, %c0_i32_0 : i32, i32
  }
  func.func @transform_2(%arg0: i32, %arg1: i32) -> (i32, i32) {
    %c0_i32 = arith.constant 0 : i32
    %c0_i32_0 = arith.constant 0 : i32
    %c0_i32_1 = arith.constant 0 : i32
    return %c0_i32, %c0_i32_0 : i32, i32
  }
  func.func @transform_3(%arg0: i32, %arg1: i32) -> (i32, i32) {
    %c0_i32 = arith.constant 0 : i32
    %c0_i32_0 = arith.constant 0 : i32
    %c0_i32_1 = arith.constant 0 : i32
    return %c0_i32, %c0_i32_0 : i32, i32
  }
  func.func @transform_4(%arg0: i32, %arg1: i32) -> (i32, i32) {
    %c0_i32 = arith.constant 0 : i32
    %c0_i32_0 = arith.constant 0 : i32
    %c0_i32_1 = arith.constant 0 : i32
    return %c0_i32, %c0_i32_0 : i32, i32
  }
  func.func @transform_5(%arg0: i32, %arg1: i32) -> (i32, i32, i32) {
    %c0_i32 = arith.constant 0 : i32
    %c0_i32_0 = arith.constant 0 : i32
    %c0_i32_1 = arith.constant 0 : i32
    %c0_i32_2 = arith.constant 0 : i32
    return %c0_i32, %c0_i32_0, %c0_i32_1 : i32, i32, i32
  }
  func.func @transform_6(%arg0: i32, %arg1: i32) -> (i32, i32) {
    %c0_i32 = arith.constant 0 : i32
    %c0_i32_0 = arith.constant 0 : i32
    %c0_i32_1 = arith.constant 0 : i32
    return %c0_i32, %c0_i32_0 : i32, i32
  }
  func.func @transform_7(%arg0: i32, %arg1: i32) -> (i32, i32, i32) {
    %c0_i32 = arith.constant 0 : i32
    %c0_i32_0 = arith.constant 0 : i32
    return %arg0, %c0_i32, %arg1 : i32, i32, i32
  }
}

</mosaic_0001>

<bundles_post_ra>
// kernel: tpu_custom_call.1
= control target key start
LH: loop header
LB: loop body
LE: loop exit
PB: predicated region body
PF: predicated region fallthrough
CT: control target
= control target key end

     0   :  { %s4519_s0 = inlined_call_operand.vmem [shape: bf16[2,18,18,64], index: 0, kind: input, shape index: {}]   ;;  %s4520_s1 = inlined_call_operand.vmem [shape: f32[64,4], index: 1, kind: input, shape index: {}]   ;;  %s4521_s2 = inlined_call_operand.vmem [shape: f32[1,4], index: 2, kind: input, shape index: {}]   ;;  %s4522_s3 = inlined_call_operand.vmem [shape: f32[4,64], index: 3, kind: input, shape index: {}]   ;;  %s4523_s4 = inlined_call_operand.vmem [shape: f32[1,64], index: 4, kind: input, shape index: {}]   ;;  %s4524_s5 = inlined_call_operand.vmem [shape: f32[9,32,64], index: 5, kind: input, shape index: {}]   ;;  %s4525_s6 = inlined_call_operand.vmem [shape: f32[32,1], index: 6, kind: input, shape index: {}]   ;;  %s4526_s7 = inlined_call_operand.hbm [shape: f32[2,32,256], index: 7, kind: output, shape index: {}]  }
   0x1   :  { %4529 = sst [smem:[#allocation7_spill]] %s4519_s0 }
   0x2   :  { %12 = vsyncpa [#allocation4], 0 }
   0x3   :  { %14 = vsyncpa [#allocation4 + $0x1], 0  ;;  %s3401_s24 = smov 0   ;;  %s3403_s25 = smov 0  }
   0x4   :  { %s3405_s26 = smov 0   ;;  %s3407_s27 = smov 0  }
   0x5   :  { %s3409_s28 = smov 0   ;;  %s3411_s29 = smov 0  }
   0x6   :  { %s3413_s30 = smov 0   ;;  %s3415_s8 = smov 0  }
   0x7 LB: > { %s2722_s9 = sadd.s32 4294967295, %s3355_s8   ;;  %s2723_s10 = sadd.s32 4294967294, %s3355_s8   ;;  %s3355_s8 = sphi %s3415_s8, %s20_s8   ;;  %s3351_s30 = sphi %s3413_s30, %s4546_s30   ;;  %s3347_s29 = sphi %s3411_s29, %s4545_s29   ;;  %s3343_s28 = sphi %s3409_s28, %s4544_s28   ;;  %s3339_s27 = sphi %s3407_s27, %s4543_s27   ;;  %s3335_s26 = sphi %s3405_s26, %s4542_s26   ;;  %s3331_s25 = sphi %s3403_s25, %s4541_s25   ;;  %s3327_s24 = sphi %s3401_s24, %s4540_s24  }
   0x8   : > { %s29_s11 = sadd.s32 1, %s3347_s29  ;;  %s32_s12 = sadd.s32 1, %s3351_s30 }
   0x9   : > { %p30_p0 = scmp.ge.s32.totalorder %s29_s11, 2  ;;  %p203_p1 = scmp.ne.s32.totalorder %s3335_s26, %s3331_s25 }
   0xa   : > { %p204_p2 = scmp.eq.s32.totalorder %s2722_s9, 3  ;;  %p209_p5 = scmp.ne.s32.totalorder %s3331_s25, %s3327_s24 }
   0xb   : > { %s4548_s11 = smov (%p30_p0, %s29_s11), 0  ;;  %s4550_s12 = smov (!%p30_p0, %s32_s12), %s3351_s30 }
   0xc   : > { %s189_s13 = ssub.s32 %s3347_s29, %s4548_s11  ;;  %p3452_p3 = por %p204_p2, %p203_p1 }
   0xd   : > { %p34_p4 = scmp.ge.s32.totalorder %s4550_s12, 2  ;;  %p210_p6 = scmp.eq.s32.totalorder %s2723_s10, 3 }
   0xe   : > { %p2726_p7 = scmp.ge.s32.totalorder %s3355_s8, 1  ;;  %p254_p9 = scmp.lt.s32.totalorder %s3355_s8, 5 }
   0xf   : > { %s4552_s12 = smov (%p34_p4, %s4550_s12), 0  ;;  %p3461_p8 = por %p210_p6, %p209_p5 }
  0x10   : > { %4531 = sst [smem:[#allocation6_spill]] %s4552_s12  ;;  %s188_s16 = ssub.s32 %s3351_s30, %s4552_s12 }
  0x11   : > { %s193_s17 = sadd.s32 1, %s3335_s26  ;;  %s190_s18 = sor.u32 %s189_s13, %s188_s16 }
  0x12   : > { %p255_p10 = pnand %p2726_p7, %p254_p9  ;;  %p191_p11 = scmp.eq.s32.totalorder %s190_s18, 0 }
  0x13   : > { %s4528_s20 = sand.u32 (!%p255_p10), 1, %s3331_s25   ;;  %p286_p12 = scmp.lt.s32.totalorder (!%p255_p10), %s3343_s28, 1 }
  0x14   : > { %s3470_s19 = scalar_select %p191_p11, %s3335_s26, %s193_s17  }
  0x15   : > { %258 = sbr.rel (%p255_p10) target bundleno = 823 (0x337), region = 48  ;;  %s2727_s21 = sshll.u32 (!%p255_p10), %s4528_s20, 5 }
  0x16   : > { %s4533_s0 = sld [smem:[#allocation7_spill]] (!%p255_p10)  ;;  %s3482_s13 = scalar_lea.vmem (!%p255_p10), [#allocation3], %s2727_s21 }
  0x17   : > { %p2729_p13 = scmp.ne.s32.totalorder (!%p255_p10), %s3339_s27, 0 }
  0x1a   : > { %s287_s22 = scalar_select %p286_p12, %s3343_s28, 1 }
  0x1b   : > { %294 = sbr.rel (%p2729_p13) target bundleno = 429 (0x1ad), region = 52 }
  0x1c   : > { %s3179_s23 = smul.u32 216, %s287_s22 }
  0x1e   : > { %s3480_s12 = scalar_lea.vmem %s4533_s0, %s3179_s23 }
  0x20   : > { %v529_v0 = vld [vmem:[%s4520_s1 + $0x38] sm:$0xff]  ;;  %v528_v1 = vld [vmem:[%s4520_s1 + $0x30] sm:$0xff]  ;;  %v527_v2 = vld [vmem:[%s4520_s1 + $0x28] sm:$0xff]  ;;  %vm403_vm0 = vcmask 523264   ;;  %vm474_vm1 = vcmask 517120   ;;  %vm561_vm2 = vcmask 1043456  }
  0x21   : > { %542 = vmatpush.msra.mxu0 %v529_v0  ;;  %v526_v3 = vld [vmem:[%s4520_s1 + $0x20] sm:$0xff]  ;;  %v525_v4 = vld [vmem:[%s4520_s1 + $0x18] sm:$0xff]  ;;  %v524_v5 = vld [vmem:[%s4520_s1 + $0x10] sm:$0xff]  ;;  %vm557_vm3 = vcmask 31744   ;;  %vm617_vm8 = vcmask 519168  }
  0x22   : > { %v523_v6 = vld [vmem:[%s4520_s1 + $0x8] sm:$0xff]  ;;  %v3128_v7 = vld [vmem:[%s3480_s12] sm:$0xff]   ;;  %v3163_v9 = vld [vmem:[%s3480_s12 + $0x18] sm:$0xff]  }
  0x23   : > { %543 = vmatpush.msra.mxu0 %v528_v1  ;;  %v298_v8 = vld [vmem:[%s3480_s12 + $0xc] sm:$0xff]   ;;  %v522_v10 = vld [vmem:[%s4520_s1] sm:$0xff]  ;;  %v3129_v12 = vunpack.c.l.bf16 %v3128_v7  ;;  %v3516_v13 = vld [vmem:[%s3480_s12 + $0x8] sm:$0x1]  ;;  %v3133_v15 = vunpack.c.l.bf16 %v3163_v9  ;;  %v3130_v18 = vunpack.c.h.bf16 %v3128_v7  ;;  %v3134_v21 = vunpack.c.h.bf16 %v3163_v9 }
  0x24   : > { %v3513_v11 = vld [vmem:[%s3480_s12 + $0x24] sm:$0xff]   ;;  %v3519_v14 = vld [vmem:[%s3480_s12 + $0x14] sm:$0x1]  ;;  %v352_v16 = vunpack.c.l.bf16 %v298_v8  ;;  %v3525_v19 = vld [vmem:[%s3480_s12 + $0x20] sm:$0x1]  ;;  %v351_v25 = vunpack.c.l.bf16 %v3516_v13  ;;  %v353_v26 = vunpack.c.h.bf16 %v298_v8 }
  0x25   : > { %544 = vmatpush.msra.mxu0 %v527_v2  ;;  %v3522_v17 = vld [vmem:[%s3480_s12 + $0x30] sm:$0xff]   ;;  %v358_v20 = vunpack.c.l.bf16 %v3513_v11  ;;  %v3529_v22 = vld [vmem:[%s3480_s12 + $0x2c] sm:$0x1]  ;;  %v310_v23 = vld [vmem:[%s3480_s12 + $0x3c] sm:$0xff]   ;;  %v354_v27 = vunpack.c.l.bf16 %v3519_v14  ;;  %v404_v30 = vsel %vm403_vm0, %v3129_v12, 0.0  ;;  %v407_v32 = vsel %vm403_vm0, %v3133_v15, 0.0 }
  0x26   : > { %v3533_v24 = vld [vmem:[%s3480_s12 + $0x48] sm:$0xff]   ;;  %v3137_v28 = vunpack.c.l.bf16 %v3522_v17  ;;  %v3539_v29 = vld [vmem:[%s3480_s12 + $0x38] sm:$0x1]  ;;  %v405_v31 = vsel %vm403_vm0, %v352_v16, 0.0  ;;  %v3138_v33 = vunpack.c.h.bf16 %v3522_v17  ;;  %v3546_v34 = vld [vmem:[%s3480_s12 + $0x44] sm:$0x1]  ;;  %v357_v37 = vunpack.c.l.bf16 %v3525_v19 }
  0x27   : > { %545 = vmatpush.msra.mxu0 %v526_v3  ;;  %v3549_v35 = vld [vmem:[%s3480_s12 + $0x50] sm:$0x1]  ;;  %v3552_v36 = vld [vmem:[%s3480_s12 + $0x54] sm:$0xff]   ;;  %v359_v38 = vunpack.c.h.bf16 %v3513_v11  ;;  %v406_v39 = vadd.f32 %v405_v31, %v404_v30  ;;  %v3141_v40 = vunpack.c.l.bf16 %v3533_v24  ;;  %v360_v41 = vunpack.c.l.bf16 %v3529_v22  ;;  %v3561_v45 = vld [vmem:[%s3480_s12 + $0x60] sm:$0xff]  }
  0x28   : > { %v364_v42 = vunpack.c.l.bf16 %v310_v23  ;;  %v409_v43 = vsel %vm403_vm0, %v358_v20, 0.0  ;;  %v3142_v44 = vunpack.c.h.bf16 %v3533_v24  ;;  %v363_v46 = vunpack.c.l.bf16 %v3539_v29  ;;  %v3565_v49 = vld [vmem:[%s3480_s12 + $0x5c] sm:$0x1]  ;;  %v3580_v61 = vld [vmem:[%s3480_s12 + $0x68] sm:$0x1]  ;;  %v322_v62 = vld [vmem:[%s3480_s12 + $0x6c] sm:$0xff]  }
  0x29   : > { %546 = vmatpush.msra.mxu0 %v525_v4  ;;  %v365_v47 = vunpack.c.h.bf16 %v310_v23  ;;  %v408_v48 = vadd.f32 %v407_v32, %v406_v39  ;;  %v366_v50 = vunpack.c.l.bf16 %v3546_v34  ;;  %v369_v51 = vunpack.c.l.bf16 %v3549_v35  ;;  %v3572_v54 = vld [vmem:[%s3480_s12 + $0x78] sm:$0xff]   ;;  %v3585_v1 = vld [vmem:[%s3480_s12 + $0x90] sm:$0xff]   ;;  %v3608_v30 = vld [vmem:[%s3480_s12 + $0x80] sm:$0x1] }
  0x2a   : > { %v370_v52 = vunpack.c.l.bf16 %v3552_v36  ;;  %v411_v53 = vsel %vm403_vm0, %v3137_v28, 0.0  ;;  %v439_v56 = vsel %vm403_vm0, %v3130_v18, 0.0  ;;  %v440_v57 = vsel %vm403_vm0, %v353_v26, 0.0  ;;  %v328_v18 = vld [vmem:[%s3480_s12 + $0x84] sm:$0xff]   ;;  %v3603_v23 = vld [vmem:[%s3480_s12 + $0x74] sm:$0x1] }
  0x2b   : > { %547 = vmatpush.msra.mxu0 %v524_v5  ;;  %v410_v55 = vadd.f32 %v409_v43, %v408_v48  ;;  %v442_v58 = vsel %vm403_vm0, %v3134_v21, 0.0  ;;  %v3145_v59 = vunpack.c.l.bf16 %v3561_v45  ;;  %v3146_v60 = vunpack.c.h.bf16 %v3561_v45  ;;  %v334_v39 = vld [vmem:[%s3480_s12 + $0x9c] sm:$0xff]  }
  0x2c   : > { %v413_v63 = vsel %vm403_vm0, %v364_v42, 0.0  ;;  %v441_v0 = vadd.f32 %v440_v57, %v439_v56  ;;  %v371_v2 = vunpack.c.h.bf16 %v3552_v36  ;;  %v372_v3 = vunpack.c.l.bf16 %v3565_v49 }
  0x2d   : > { %548 = vmatpush.msra.mxu0 %v523_v6  ;;  %v412_v4 = vadd.f32 %v411_v53, %v410_v55  ;;  %v444_v5 = vsel %vm403_vm0, %v359_v38, 0.0  ;;  %v3149_v6 = vunpack.c.l.bf16 %v3572_v54  ;;  %v3150_v7 = vunpack.c.h.bf16 %v3572_v54  ;;  %v3169_v53 = vld [vmem:[%s3480_s12 + $0xa8] sm:$0xff]  }
  0x2e   : > { %v415_v8 = vsel %vm403_vm0, %v3141_v40, 0.0  ;;  %v443_v9 = vadd.f32 %v442_v58, %v441_v0  ;;  %v376_v11 = vunpack.c.l.bf16 %v322_v62  ;;  %v446_v13 = vsel %vm403_vm0, %v3138_v33, 0.0 }
  0x2f   : > { %549 = vmatpush.msra.mxu0 %v522_v10  ;;  %v375_v10 = vunpack.c.l.bf16 %v3580_v61  ;;  %v414_v12 = vadd.f32 %v413_v63, %v412_v4  ;;  %v3153_v14 = vunpack.c.l.bf16 %v3585_v1  ;;  %v417_v15 = vsel %vm403_vm0, %v370_v52, 0.0  ;;  %v340_v63 = vld [vmem:[%s3480_s12 + $0xb4] sm:$0xff]  }
  0x30   : > { %v445_v16 = vadd.f32 %v444_v5, %v443_v9  ;;  %v448_v17 = vsel %vm403_vm0, %v365_v47, 0.0  ;;  %v475_v20 = vsel %vm474_vm1, %v351_v25, 0.0  ;;  %v476_v21 = vsel %vm474_vm1, %v354_v27, 0.0  ;;  %v3618_v47 = vld [vmem:[%s3480_s12 + $0x8c] sm:$0x1] }
  0x31   : > { %v416_v19 = vadd.f32 %v415_v8, %v414_v12  ;;  %v478_v22 = vsel %vm474_vm1, %v357_v37, 0.0  ;;  %v3154_v24 = vunpack.c.h.bf16 %v3585_v1  ;;  %v419_v26 = vsel %vm403_vm0, %v3145_v59, 0.0  ;;  %v333_v8 = vld [vmem:[%s3480_s12 + $0x98] sm:$0x1] }
  0x32   : > { %v447_v28 = vadd.f32 %v446_v13, %v445_v16  ;;  %v477_v29 = vadd.f32 %v476_v21, %v475_v20  ;;  %v377_v31 = vunpack.c.h.bf16 %v322_v62  ;;  %v450_v25 = vsel %vm403_vm0, %v3142_v44, 0.0 }
  0x33   : > { %v418_v32 = vadd.f32 %v417_v15, %v416_v19  ;;  %v480_v27 = vsel %vm474_vm1, %v360_v41, 0.0  ;;  %v382_v33 = vunpack.c.l.bf16 %v328_v18  ;;  %v421_v36 = vsel %vm403_vm0, %v376_v11, 0.0  ;;  %v3170_v15 = vld [vmem:[%s3480_s12 + $0xc0] sm:$0xff]  }
  0x34   : > { %v449_v37 = vadd.f32 %v448_v17, %v447_v28  ;;  %v479_v38 = vadd.f32 %v478_v22, %v477_v29  ;;  %v378_v40 = vunpack.c.l.bf16 %v3603_v23  ;;  %v452_v43 = vsel %vm403_vm0, %v371_v2, 0.0  ;;  %v336_v22 = vld [vmem:[%s3480_s12 + $0xa4] sm:$0x1] }
  0x35   : > { %v420_v42 = vadd.f32 %v419_v26, %v418_v32  ;;  %v482_v45 = vsel %vm474_vm1, %v363_v46, 0.0  ;;  %v381_v44 = vunpack.c.l.bf16 %v3608_v30  ;;  %v423_v41 = vsel %vm403_vm0, %v3149_v6, 0.0  ;;  %v346_v26 = vld [vmem:[%s3480_s12 + $0xcc] sm:$0xff]  }
  0x36   : > { %v451_v48 = vadd.f32 %v450_v25, %v449_v37  ;;  %v481_v52 = vadd.f32 %v480_v27, %v479_v38  ;;  %v383_v54 = vunpack.c.h.bf16 %v328_v18  ;;  %v454_v56 = vsel %vm403_vm0, %v3146_v60, 0.0  ;;  %v339_v37 = vld [vmem:[%s3480_s12 + $0xb0] sm:$0x1] }
  0x37   : > { %v422_v55 = vadd.f32 %v421_v36, %v420_v42  ;;  %v484_v57 = vsel %vm474_vm1, %v366_v50, 0.0  ;;  %v388_v58 = vunpack.c.l.bf16 %v334_v39  ;;  %v425_v46 = vsel %vm403_vm0, %v382_v33, 0.0 }
  0x38   : > { %v453_v59 = vadd.f32 %v452_v43, %v451_v48  ;;  %v483_v62 = vadd.f32 %v482_v45, %v481_v52  ;;  %v384_v0 = vunpack.c.l.bf16 %v3618_v47  ;;  %v456_v4 = vsel %vm403_vm0, %v377_v31, 0.0  ;;  %v342_v47 = vld [vmem:[%s3480_s12 + $0xbc] sm:$0x1] }
  0x39   : > { %v424_v2 = vadd.f32 %v423_v41, %v422_v55  ;;  %v486_v60 = vsel %vm474_vm1, %v369_v51, 0.0  ;;  %v3157_v5 = vunpack.c.l.bf16 %v3169_v53  ;;  %v427_v34 = vsel %vm403_vm0, %v3153_v14, 0.0  ;;  %v345_v55 = vld [vmem:[%s3480_s12 + $0xc8] sm:$0x1] }
  0x3a   : > { %v455_v50 = vadd.f32 %v454_v56, %v453_v59  ;;  %v485_v6 = vadd.f32 %v484_v57, %v483_v62  ;;  %v3158_v9 = vunpack.c.h.bf16 %v3169_v53  ;;  %v458_v12 = vsel %vm403_vm0, %v3150_v7, 0.0 }
  0x3b   : > { %v426_v11 = vadd.f32 %v425_v46, %v424_v2  ;;  %v488_v13 = vsel %vm474_vm1, %v372_v3, 0.0  ;;  %v394_v35 = vunpack.c.l.bf16 %v340_v63  ;;  %v429_v51 = vsel %vm403_vm0, %v388_v58, 0.0 }
  0x3c   : > { %v457_v16 = vadd.f32 %v456_v4, %v455_v50  ;;  %v487_v17 = vadd.f32 %v486_v60, %v485_v6  ;;  %v389_v14 = vunpack.c.h.bf16 %v334_v39  ;;  %v460_v19 = vsel %vm403_vm0, %v383_v54, 0.0 }
  0x3d   : > { %v428_v18 = vadd.f32 %v427_v34, %v426_v11  ;;  %v490_v20 = vsel %vm474_vm1, %v375_v10, 0.0  ;;  %v387_v7 = vunpack.c.l.bf16 %v333_v8  ;;  %v431_v49 = vsel %vm403_vm0, %v3157_v5, 0.0 }
  0x3e   : > { %v459_v21 = vadd.f32 %v458_v12, %v457_v16  ;;  %v489_v3 = vadd.f32 %v488_v13, %v487_v17  ;;  %v3161_v23 = vunpack.c.l.bf16 %v3170_v15  ;;  %v462_v29 = vsel %vm403_vm0, %v3154_v24, 0.0 }
  0x3f   : > { %v430_v28 = vadd.f32 %v429_v51, %v428_v18  ;;  %v492_v30 = vsel %vm474_vm1, %v378_v40, 0.0  ;;  %v3162_v31 = vunpack.c.h.bf16 %v3170_v15  ;;  %v433_v61 = vsel %vm403_vm0, %v394_v35, 0.0 }
  0x40   : > { %v461_v10 = vadd.f32 %v460_v19, %v459_v21  ;;  %v491_v32 = vadd.f32 %v490_v20, %v489_v3  ;;  %v395_v25 = vunpack.c.h.bf16 %v340_v63  ;;  %v464_v33 = vsel %vm403_vm0, %v389_v14, 0.0 }
  0x41   : > { %v432_v27 = vadd.f32 %v431_v49, %v430_v28  ;;  %v494_v36 = vsel %vm474_vm1, %v381_v44, 0.0  ;;  %v390_v38 = vunpack.c.l.bf16 %v336_v22  ;;  %v400_v1 = vunpack.c.l.bf16 %v346_v26 }
  0x42   : > { %v463_v39 = vadd.f32 %v462_v29, %v461_v10  ;;  %v493_v24 = vadd.f32 %v492_v30, %v491_v32  ;;  %v435_v40 = vsel %vm403_vm0, %v3161_v23, 0.0  ;;  %v466_v43 = vsel %vm403_vm0, %v3158_v9, 0.0  ;;  %v555_v29 = vld [vmem:[%s4522_s3] sm:$0xf] }
  0x43   : > { %v434_v42 = vadd.f32 %v433_v61, %v432_v27  ;;  %v496_v45 = vsel %vm474_vm1, %v384_v0, 0.0  ;;  %v393_v52 = vunpack.c.l.bf16 %v339_v37  ;;  %v401_v53 = vunpack.c.h.bf16 %v346_v26  ;;  %v348_v0 = vld [vmem:[%s3480_s12 + $0xd4] sm:$0x1]  ;;  %2731 = vmatpush.msk.msra.mxu1 %vm561_vm2, %v555_v29  ;;  %v530_v30 = vld [vmem:[%s4521_s2] sm:$0x1] }
  0x44   : > { %v465_v41 = vadd.f32 %v464_v33, %v463_v39  ;;  %v495_v48 = vadd.f32 %v494_v36, %v493_v24  ;;  %v468_v44 = vsel %vm403_vm0, %v395_v25, 0.0  ;;  %v498_v54 = vsel %vm474_vm1, %v387_v7, 0.0  ;;  %v556_v32 = vld [vmem:[%s4523_s4] sm:$0x1] }
  0x45   : > { %v436_v56 = vadd.f32 %v435_v40, %v434_v42  ;;  %v396_v46 = vunpack.c.l.bf16 %v342_v47  ;;  %v437_v59 = vsel %vm403_vm0, %v400_v1, 0.0  ;;  %v470_v62 = vsel %vm403_vm0, %v3162_v31, 0.0 }
  0x46   : > { %v467_v57 = vadd.f32 %v466_v43, %v465_v41  ;;  %v497_v58 = vadd.f32 %v496_v45, %v495_v48  ;;  %v500_v63 = vsel %vm474_vm1, %v390_v38, 0.0  ;;  %v399_v60 = vunpack.c.l.bf16 %v345_v55  ;;  %v604_v41 = vld [vmem:[%s4524_s5] sm:$0xff] }
  0x47   : > { %v472_v5 = vsel %vm403_vm0, %v401_v53, 0.0  ;;  %v502_v34 = vsel %vm474_vm1, %v393_v52, 0.0  ;;  %v438_v50 = vadd.f32 %v437_v59, %v436_v56  ;;  %v402_v9 = vunpack.c.l.bf16 %v348_v0  ;;  %v605_v52 = vld [vmem:[%s4524_s5 + $0x8] sm:$0xff]  ;;  %v606_v53 = vld [vmem:[%s4524_s5 + $0x10] sm:$0xff]  ;;  %v2734_v55 = vld [vmem:[%s4524_s5 + $0x20] sm:$0xff] }
  0x48   : > { %v469_v2 = vadd.f32 %v468_v44, %v467_v57  ;;  %v499_v4 = vadd.f32 %v498_v54, %v497_v58  ;;  %v504_v11 = vsel %vm474_vm1, %v396_v46, 0.0  ;;  %v506_v15 = vsel %vm474_vm1, %v399_v60, 0.0  ;;  %v607_v44 = vld [vmem:[%s4524_s5 + $0x18] sm:$0xff]  ;;  %v2735_v56 = vld [vmem:[%s4524_s5 + $0x28] sm:$0xff]  ;;  %v2736_v57 = vld [vmem:[%s4524_s5 + $0x30] sm:$0xff] }
  0x49   : > { %v510_v51 = vsel %vm403_vm0, %v438_v50, 0.0  ;;  %v508_v17 = vsel %vm474_vm1, %v402_v9, 0.0 }
  0x4a   : > { %v471_v6 = vadd.f32 %v470_v62, %v469_v2  ;;  %v501_v8 = vadd.f32 %v500_v63, %v499_v4  ;;  %v2737_v63 = vld [vmem:[%s4524_s5 + $0x38] sm:$0xff]  ;;  %v2738_v4 = vld [vmem:[%s4524_s5 + $0x40] sm:$0xff] }
  0x4c   : > { %v473_v12 = vadd.f32 %v472_v5, %v471_v6  ;;  %v503_v13 = vadd.f32 %v502_v34, %v501_v8  ;;  %v2739_v6 = vld [vmem:[%s4524_s5 + $0x48] sm:$0xff] }
  0x4e   : > { %v505_v35 = vadd.f32 %v504_v11, %v503_v13  ;;  %v511_v16 = vsel %vm403_vm0, %v473_v12, 0.0  ;;  %v2740_v11 = vld [vmem:[%s4524_s5 + $0x50] sm:$0xff]  ;;  %v2741_v13 = vld [vmem:[%s4524_s5 + $0x58] sm:$0xff] }
  0x4f   : > { %v512_v18 = vadd.f32 %v511_v16, %v510_v51  ;;  %v2742_v16 = vld [vmem:[%s4524_s5 + $0x60] sm:$0xff] }
  0x50   : > { %v507_v14 = vadd.f32 %v506_v15, %v505_v35 }
  0x52   : > { %v509_v19 = vadd.f32 %v508_v17, %v507_v14 }
  0x54   : > { %v513_v20 = vsel %vm474_vm1, %v509_v19, 0.0 }
  0x55   : > { %v514_v7 = vadd.f32 %v513_v20, %v512_v18  ;;  %v2743_v18 = vld [vmem:[%s4524_s5 + $0x68] sm:$0xff] }
  0x57   : > { %v515_v49 = vrot.slane %v514_v7, 4 }
  0x59   : > { %v516_v21 = vadd.f32 %v515_v49, %v514_v7  ;;  %v2744_v7 = vld [vmem:[%s4524_s5 + $0x70] sm:$0xff] }
  0x5b   : > { %v517_v3 = vrot.slane %v516_v21, 2 }
  0x5d   : > { %v518_v22 = vadd.f32 %v517_v3, %v516_v21  ;;  %v2745_v21 = vld [vmem:[%s4524_s5 + $0x78] sm:$0xff] }
  0x5f   : > { %v519_v23 = vrot.slane %v518_v22, 1 }
  0x61   : > { %v520_v26 = vadd.f32 %v519_v23, %v518_v22 }
  0x63   : > { %v521_v28 = vmul.f32 0.00390625, %v520_v26  ;;  %v2746_v26 = vld [vmem:[%s4524_s5 + $0x80] sm:$0xff] }
  0x65   : > { %2730 = vmatmul.msk.f32.vlgmr.msra.gmra.mxu0 %vm403_vm0, %v521_v28 }
  0xe2   : > { %v551_v31 = vpop.f32.mrf.mxu0 }
  0xe3   : > { %v552_v61 = vadd.f32 %v551_v31, %v530_v30  ;;  %v2747_v30 = vld [vmem:[%s4524_s5 + $0x88] sm:$0xff] }
  0xe5   : > { %v554_v10 = vmax.f32 %v552_v61, 0.0 }
  0xe7   : > { %2732 = vmatmul.msk.f32.vlgmr.msra.gmra.mxu1 %vm557_vm3, %v554_v10  ;;  %v2748_v10 = vld [vmem:[%s4524_s5 + $0x90] sm:$0xff] }
 0x164   : > { %v582_v25 = vpop.f32.mrf.mxu1 }
 0x165   : > { %v583_v27 = vadd.f32 %v582_v25, %v556_v32  ;;  %v2749_v25 = vld [vmem:[%s4524_s5 + $0x98] sm:$0xff] }
 0x167   : > { %v2733_v33 = vmul.f32 -1.442695, %v583_v27 }
 0x169   : > { %3255 = vpow2.f32 %v2733_v33 }
 0x16f   : > { %v3256_v36 = vpop.eup %3255 }
 0x170   : > { %v588_v37 = vadd.f32 1.0, %v3256_v36 }
 0x172   : > { %3257 = vrcp.f32 %v588_v37  ;;  %v600_v24 = vand.u32 2147483648, %v588_v37  ;;  %v598_v40 = vand.u32 2147483647, %v588_v37  ;;  %vm594_vm5 = vweird.f32 %v588_v37 }
 0x174   : > { %v601_v45 = vor.u32 1.1754944e-38, %v600_v24  ;;  %vm599_vm7 = vcmp.eq.f32.partialorder %v598_v40, 8.507059e+37  ;;  %v2752_v40 = vld [vmem:[%s4524_s5 + $0xb0] sm:$0xff] }
 0x178   : > { %v3258_v38 = vpop.eup %3257 }
 0x179   : > { %v590_v1 = vmul.f32 %v3258_v38, %v588_v37  ;;  %vm595_vm4 = vweird.f32 %v3258_v38  ;;  %v2750_v37 = vld [vmem:[%s4524_s5 + $0xa0] sm:$0xff] }
 0x17a   : > { %vm596_vm6 = vmor %vm594_vm5, %vm595_vm4 }
 0x17b   : > { %v591_v39 = vsub.f32 1.0, %v590_v1 }
 0x17d   : > { %v592_v42 = vmul.f32 %v3258_v38, %v591_v39  ;;  %v2751_v39 = vld [vmem:[%s4524_s5 + $0xa8] sm:$0xff] }
 0x17f   : > { %v593_v43 = vadd.f32 %v3258_v38, %v592_v42 }
 0x181   : > { %v597_v47 = vsel %vm596_vm6, %v3258_v38, %v593_v43 }
 0x182   : > { %v602_v48 = vsel %vm599_vm7, %v601_v45, %v597_v47  ;;  %v2753_v45 = vld [vmem:[%s4524_s5 + $0xb8] sm:$0xff] }
 0x183   : > { %v3698_v54 = vperm.slane %v602_v48, 0 }
 0x185   : > { %v609_v58 = vmul.f32 %v3698_v54, %v604_v41  ;;  %v610_v46 = vmul.f32 %v3698_v54, %v605_v52  ;;  %v611_v59 = vmul.f32 %v3698_v54, %v606_v53  ;;  %v612_v62 = vmul.f32 %v3698_v54, %v607_v44  ;;  %v2754_v52 = vld [vmem:[%s4524_s5 + $0xc0] sm:$0xff] }
 0x186   : > { %v627_v0 = vmul.f32 %v2734_v55, %v3698_v54  ;;  %v628_v2 = vmul.f32 %v2735_v56, %v3698_v54  ;;  %v629_v50 = vmul.f32 %v2736_v57, %v3698_v54  ;;  %v630_v9 = vmul.f32 %v2737_v63, %v3698_v54  ;;  %v2755_v55 = vld [vmem:[%s4524_s5 + $0xc8] sm:$0xff] }
 0x187   : > { %v613_v60 = vpack.c.bf16 %v609_v58, %v609_v58  ;;  %v614_v5 = vpack.c.bf16 %v610_v46, %v610_v46  ;;  %v615_v34 = vpack.c.bf16 %v611_v59, %v611_v59  ;;  %v616_v8 = vpack.c.bf16 %v612_v62, %v612_v62  ;;  %v2756_v58 = vld [vmem:[%s4524_s5 + $0xd0] sm:$0xff]  ;;  %v2757_v59 = vld [vmem:[%s4524_s5 + $0xd8] sm:$0xff] }
 0x188   : > { %v631_v12 = vpack.c.bf16 %v627_v0, %v627_v0  ;;  %v645_v15 = vmul.f32 %v2738_v4, %v3698_v54  ;;  %v632_v35 = vpack.c.bf16 %v628_v2, %v628_v2  ;;  %v646_v51 = vmul.f32 %v2739_v6, %v3698_v54  ;;  %v2758_v2 = vld [vmem:[%s4524_s5 + $0xe0] sm:$0xff]  ;;  %v2760_v6 = vld [vmem:[%s4524_s5 + $0xf0] sm:$0xff] }
 0x189   : > { %618 = vst.msk [vmem:[#allocation2] sm:$0xf] %vm617_vm8, %v613_v60  ;;  %v633_v17 = vpack.c.bf16 %v629_v50, %v629_v50  ;;  %v647_v14 = vmul.f32 %v2740_v11, %v3698_v54  ;;  %v634_v19 = vpack.c.bf16 %v630_v9, %v630_v9  ;;  %v648_v20 = vmul.f32 %v2741_v13, %v3698_v54  ;;  %v2761_v9 = vld [vmem:[%s4524_s5 + $0xf8] sm:$0xff] }
 0x18a   : > { %619 = vst.msk [vmem:[#allocation2 + $0x4] sm:$0xf] %vm617_vm8, %v614_v5  ;;  %v649_v49 = vpack.c.bf16 %v645_v15, %v645_v15  ;;  %v663_v3 = vmul.f32 %v2742_v16, %v3698_v54  ;;  %v650_v22 = vpack.c.bf16 %v646_v51, %v646_v51  ;;  %v664_v23 = vmul.f32 %v2743_v18, %v3698_v54  ;;  %v2759_v5 = vld [vmem:[%s4524_s5 + $0xe8] sm:$0xff]  ;;  %v2762_v15 = vld [vmem:[%s4524_s5 + $0x100] sm:$0xff]  ;;  %v2764_v18 = vld [vmem:[%s4524_s5 + $0x110] sm:$0xff] }
 0x18b   : > { %620 = vst.msk [vmem:[#allocation2 + $0x8] sm:$0xf] %vm617_vm8, %v615_v34  ;;  %v651_v28 = vpack.c.bf16 %v647_v14, %v647_v14  ;;  %v665_v29 = vmul.f32 %v2744_v7, %v3698_v54  ;;  %v652_v31 = vpack.c.bf16 %v648_v20, %v648_v20  ;;  %v666_v61 = vmul.f32 %v2745_v21, %v3698_v54  ;;  %v2763_v16 = vld [vmem:[%s4524_s5 + $0x108] sm:$0xff]  ;;  %v2765_v20 = vld [vmem:[%s4524_s5 + $0x118] sm:$0xff] }
 0x18c   : > { %621 = vst.msk [vmem:[#allocation2 + $0xc] sm:$0xf] %vm617_vm8, %v616_v8  ;;  %v667_v32 = vpack.c.bf16 %v663_v3, %v663_v3  ;;  %v681_v27 = vmul.f32 %v2746_v26, %v3698_v54  ;;  %v668_v33 = vpack.c.bf16 %v664_v23, %v664_v23  ;;  %v682_v36 = vmul.f32 %v2747_v30, %v3698_v54 }
 0x18d   : > { %636 = vst.msk [vmem:[#allocation2 + $0x10] sm:$0xf] %vm617_vm8, %v631_v12  ;;  %v669_v38 = vpack.c.bf16 %v665_v29, %v665_v29  ;;  %v683_v1 = vmul.f32 %v2748_v10, %v3698_v54  ;;  %v670_v24 = vpack.c.bf16 %v666_v61, %v666_v61  ;;  %v684_v42 = vmul.f32 %v2749_v25, %v3698_v54 }
 0x18e   : > { %637 = vst.msk [vmem:[#allocation2 + $0x14] sm:$0xf] %vm617_vm8, %v632_v35  ;;  %v685_v43 = vpack.c.bf16 %v681_v27, %v681_v27  ;;  %v699_v47 = vmul.f32 %v2750_v37, %v3698_v54  ;;  %v686_v41 = vpack.c.bf16 %v682_v36, %v682_v36  ;;  %v700_v48 = vmul.f32 %v2751_v39, %v3698_v54 }
 0x18f   : > { %638 = vst.msk [vmem:[#allocation2 + $0x18] sm:$0xf] %vm617_vm8, %v633_v17  ;;  %v687_v53 = vpack.c.bf16 %v683_v1, %v683_v1  ;;  %v701_v44 = vmul.f32 %v2752_v40, %v3698_v54  ;;  %v688_v56 = vpack.c.bf16 %v684_v42, %v684_v42  ;;  %v702_v57 = vmul.f32 %v2753_v45, %v3698_v54 }
 0x190   : > { %639 = vst.msk [vmem:[#allocation2 + $0x1c] sm:$0xf] %vm617_vm8, %v634_v19  ;;  %v703_v46 = vpack.c.bf16 %v699_v47, %v699_v47  ;;  %v717_v62 = vmul.f32 %v2754_v52, %v3698_v54  ;;  %v704_v63 = vpack.c.bf16 %v700_v48, %v700_v48  ;;  %v718_v0 = vmul.f32 %v2755_v55, %v3698_v54 }
 0x191   : > { %654 = vst.msk [vmem:[#allocation2 + $0x20] sm:$0xf] %vm617_vm8, %v649_v49  ;;  %v705_v4 = vpack.c.bf16 %v701_v44, %v701_v44  ;;  %v719_v60 = vmul.f32 %v2756_v58, %v3698_v54  ;;  %v706_v34 = vpack.c.bf16 %v702_v57, %v702_v57  ;;  %v720_v50 = vmul.f32 %v2757_v59, %v3698_v54 }
 0x192   : > { %655 = vst.msk [vmem:[#allocation2 + $0x24] sm:$0xf] %vm617_vm8, %v650_v22  ;;  %v721_v8 = vpack.c.bf16 %v717_v62, %v717_v62  ;;  %v735_v11 = vmul.f32 %v2758_v2, %v3698_v54  ;;  %v722_v12 = vpack.c.bf16 %v718_v0, %v718_v0  ;;  %v736_v13 = vmul.f32 %v2759_v5, %v3698_v54 }
 0x193   : > { %656 = vst.msk [vmem:[#allocation2 + $0x28] sm:$0xf] %vm617_vm8, %v651_v28  ;;  %v723_v35 = vpack.c.bf16 %v719_v60, %v719_v60  ;;  %v737_v51 = vmul.f32 %v2760_v6, %v3698_v54  ;;  %v724_v17 = vpack.c.bf16 %v720_v50, %v720_v50  ;;  %v738_v14 = vmul.f32 %v2761_v9, %v3698_v54 }
 0x194   : > { %657 = vst.msk [vmem:[#allocation2 + $0x2c] sm:$0xf] %vm617_vm8, %v652_v31  ;;  %v739_v19 = vpack.c.bf16 %v735_v11, %v735_v11  ;;  %v753_v7 = vmul.f32 %v2762_v15, %v3698_v54  ;;  %v740_v49 = vpack.c.bf16 %v736_v13, %v736_v13  ;;  %v754_v21 = vmul.f32 %v2763_v16, %v3698_v54 }
 0x195   : > { %672 = vst.msk [vmem:[#allocation2 + $0x30] sm:$0xf] %vm617_vm8, %v667_v32  ;;  %v741_v3 = vpack.c.bf16 %v737_v51, %v737_v51  ;;  %v755_v22 = vmul.f32 %v2764_v18, %v3698_v54  ;;  %v742_v23 = vpack.c.bf16 %v738_v14, %v738_v14  ;;  %v756_v26 = vmul.f32 %v2765_v20, %v3698_v54 }
 0x196   : > { %673 = vst.msk [vmem:[#allocation2 + $0x34] sm:$0xf] %vm617_vm8, %v668_v33  ;;  %v757_v28 = vpack.c.bf16 %v753_v7, %v753_v7  ;;  %v758_v29 = vpack.c.bf16 %v754_v21, %v754_v21 }
 0x197   : > { %674 = vst.msk [vmem:[#allocation2 + $0x38] sm:$0xf] %vm617_vm8, %v669_v38  ;;  %v759_v30 = vpack.c.bf16 %v755_v22, %v755_v22  ;;  %v760_v31 = vpack.c.bf16 %v756_v26, %v756_v26 }
 0x198   : > { %675 = vst.msk [vmem:[#allocation2 + $0x3c] sm:$0xf] %vm617_vm8, %v670_v24 }
 0x199   : > { %690 = vst.msk [vmem:[#allocation2 + $0x40] sm:$0xf] %vm617_vm8, %v685_v43 }
 0x19a   : > { %691 = vst.msk [vmem:[#allocation2 + $0x44] sm:$0xf] %vm617_vm8, %v686_v41 }
 0x19b   : > { %692 = vst.msk [vmem:[#allocation2 + $0x48] sm:$0xf] %vm617_vm8, %v687_v53 }
 0x19c   : > { %693 = vst.msk [vmem:[#allocation2 + $0x4c] sm:$0xf] %vm617_vm8, %v688_v56 }
 0x19d   : > { %708 = vst.msk [vmem:[#allocation2 + $0x50] sm:$0xf] %vm617_vm8, %v703_v46 }
 0x19e   : > { %709 = vst.msk [vmem:[#allocation2 + $0x54] sm:$0xf] %vm617_vm8, %v704_v63 }
 0x19f   : > { %710 = vst.msk [vmem:[#allocation2 + $0x58] sm:$0xf] %vm617_vm8, %v705_v4 }
 0x1a0   : > { %711 = vst.msk [vmem:[#allocation2 + $0x5c] sm:$0xf] %vm617_vm8, %v706_v34 }
 0x1a1   : > { %726 = vst.msk [vmem:[#allocation2 + $0x60] sm:$0xf] %vm617_vm8, %v721_v8 }
 0x1a2   : > { %727 = vst.msk [vmem:[#allocation2 + $0x64] sm:$0xf] %vm617_vm8, %v722_v12 }
 0x1a3   : > { %728 = vst.msk [vmem:[#allocation2 + $0x68] sm:$0xf] %vm617_vm8, %v723_v35 }
 0x1a4   : > { %729 = vst.msk [vmem:[#allocation2 + $0x6c] sm:$0xf] %vm617_vm8, %v724_v17 }
 0x1a5   : > { %744 = vst.msk [vmem:[#allocation2 + $0x70] sm:$0xf] %vm617_vm8, %v739_v19 }
 0x1a6   : > { %745 = vst.msk [vmem:[#allocation2 + $0x74] sm:$0xf] %vm617_vm8, %v740_v49 }
 0x1a7   : > { %746 = vst.msk [vmem:[#allocation2 + $0x78] sm:$0xf] %vm617_vm8, %v741_v3 }
 0x1a8   : > { %747 = vst.msk [vmem:[#allocation2 + $0x7c] sm:$0xf] %vm617_vm8, %v742_v23 }
 0x1a9   : > { %762 = vst.msk [vmem:[#allocation2 + $0x80] sm:$0xf] %vm617_vm8, %v757_v28 }
 0x1aa   : > { %763 = vst.msk [vmem:[#allocation2 + $0x84] sm:$0xf] %vm617_vm8, %v758_v29 }
 0x1ab   : > { %764 = vst.msk [vmem:[#allocation2 + $0x88] sm:$0xf] %vm617_vm8, %v759_v30 }
 0x1ac   : > { %765 = vst.msk [vmem:[#allocation2 + $0x8c] sm:$0xf] %vm617_vm8, %v760_v31 }
 0x1ad PF: > { %s3084_s21 = smul.u32 96, %s3339_s27  ;;  %vm1210_vm9 = vcmask 1042432   ;;  %vm1211_vm10 = vcmask 1046532   ;;  %vm1032_vm11 = vcmask 523264   ;;  %vm803_vm12 = vsmask.f32 3328 }
 0x1ae   : > { %vm804_vm13 = vsmask.f32 7440  ;;  %vm3877_vm14 = vmor %vm1210_vm9, %vm1211_vm10  ;;  %s3080_s23 = sshll.u32 %s3343_s28, 3  ;;  %s2634_s28 = sshll.u32 %s3482_s13, 4  ;;  %s2635_s28 = int_to_ptr.vmem [resolvable:$true] %s2634_s28 }
 0x1af   : > { %s3870_s9 = scalar_lea.vmem %s3480_s12, %s3084_s21  ;;  %vm3898_vm15 = vmor %vm803_vm12, %vm804_vm13  ;;  %s2631_s21 = sadd.s32 %s3339_s27, %s3080_s23 }
 0x1b0   : > { %v3092_v54 = vld [vmem:[%s3870_s9 + $0x54] sm:$0xff]  ;;  %v3091_v61 = vld [vmem:[%s3870_s9 + $0x48] sm:$0xff]  ;;  %v797_v32 = vld [vmem:[%s3870_s9 + $0x5c] sm:$0x1]  ;;  %s4538_s27 = sand.u32 1, %s3331_s25  }
 0x1b1   : > { %v785_v10 = vld [vmem:[%s3870_s9 + $0x58] sm:$0xf]  ;;  %v1188_v25 = vld [vmem:[%s3870_s9 + $0x54] sm:$0xe]  ;;  %v1160_v37 = vsel %vm1032_vm11, %v3092_v54, 0  ;;  %v1267_v1 = vrot.slane %v797_v32, 5 }
 0x1b2   : > { %v1264_v33 = vrot.slane %v785_v10, 5  ;;  %v984_v36 = vshll.u32 %v785_v10, 16  ;;  %v2828_v38 = vrot.slane %v1188_v25, 9  ;;  %v784_v39 = vld [vmem:[%s3870_s9 + $0x54] sm:$0xf]  ;;  %1162 = vmatpush.bf16.xpose.msra.mxu1 %v1160_v37  ;;  %v1157_v24 = vsel %vm1032_vm11, %v3091_v61, 0 }
 0x1b3   : > { %v975_v40 = vshrl.u32 %v784_v39, 16  ;;  %v978_v43 = vshll.u32 %v784_v39, 16  ;;  %v3106_v45 = vld [vmem:[%s3870_s9 + $0x60] sm:$0xff]  ;;  %v988_v52 = vshrl.u32 %v785_v10, 16  ;;  %v994_v53 = vshll.u32 %v797_v32, 16  ;;  %v3105_v19 = vld [vmem:[%s3870_s9 + $0x54] sm:$0xff] }
 0x1b4   : > { %v1266_v42 = vrot.slane %v1264_v33, 4  ;;  %v3090_v47 = vld [vmem:[%s3870_s9 + $0x3c] sm:$0xff]  ;;  %v1265_v41 = vsel %vm3877_vm14, %v2828_v38, %v1264_v33  ;;  %v986_v48 = vrot.slane %v984_v36, 5  ;;  %v796_v44 = vld [vmem:[%s3870_s9 + $0x50] sm:$0x1]  ;;  %v1459_v2 = vsel %vm1032_vm11, %v3106_v45, 0 }
 0x1b5   : > { %v1293_v56 = vunpack.c.l.b16 %v1265_v41  ;;  %v977_v57 = vrot.slane %v975_v40, 4  ;;  %v980_v58 = vrot.slane %v978_v43, 5  ;;  %v1187_v46 = vld [vmem:[%s3870_s9 + $0x48] sm:$0xe]  ;;  %v990_v63 = vrot.slane %v988_v52, 4  ;;  %1461 = vmatpush.bf16.xpose.msra.mxu3 %v1459_v2  ;;  %v3089_v20 = vld [vmem:[%s3870_s9 + $0x30] sm:$0xff] }
 0x1b6   : > { %v1268_v55 = vsel %vm3877_vm14, %v1266_v42, %v1267_v1  ;;  %v782_v59 = vld [vmem:[%s3870_s9 + $0x48] sm:$0xf]  ;;  %v996_v0 = vrot.slane %v994_v53, 5  ;;  %v783_v4 = vld [vmem:[%s3870_s9 + $0x4c] sm:$0xf]  ;;  %v1154_v5 = vsel %vm1032_vm11, %v3090_v47, 0 }
 0x1b7   : > { %v1294_v62 = vunpack.c.l.b16 %v1268_v55  ;;  %v981_v60 = vor.u32 %v980_v58, %v977_v57  ;;  %v2827_v34 = vrot.slane %v1187_v46, 9  ;;  %v1257_v50 = vrot.slane %v783_v4, 5  ;;  %v1186_v29 = vld [vmem:[%s3870_s9 + $0x3c] sm:$0xe]  ;;  %v795_v10 = vld [vmem:[%s3870_s9 + $0x44] sm:$0x1] }
 0x1b8   : > { %v991_v9 = vor.u32 %v990_v63, %v986_v48  ;;  %v1260_v11 = vrot.slane %v796_v44, 5  ;;  %v951_v12 = vshrl.u32 %v782_v59, 16  ;;  %v954_v51 = vshll.u32 %v782_v59, 16  ;;  %v780_v37 = vld [vmem:[%s3870_s9 + $0x3c] sm:$0xf]  ;;  %v3104_v58 = vld [vmem:[%s3870_s9 + $0x48] sm:$0xff] }
 0x1b9   : > { %v1302_v6 = vpack.c.b16 %v1294_v62, %v1293_v56  ;;  %v982_v13 = vrot.slane %v981_v60, 4  ;;  %v1258_v15 = vsel %vm3877_vm14, %v2827_v34, %v1257_v50  ;;  %v1259_v35 = vrot.slane %v1257_v50, 4  ;;  %v3088_v46 = vld [vmem:[%s3870_s9 + $0x24] sm:$0xff]  ;;  %v1185_v50 = vld [vmem:[%s3870_s9 + $0x30] sm:$0xe]  ;;  %s2621_s20 = scalar_lea.sflag [#allocation4], %s4538_s27 }
 0x1ba   : > { %v992_v17 = vrot.slane %v991_v9, 4  ;;  %v1291_v14 = vunpack.c.l.b16 %v1258_v15  ;;  %v953_v18 = vrot.slane %v951_v12, 4  ;;  %1163 = vmatpush.bf16.xpose.msra.mxu1 %v1157_v24  ;;  %v956_v21 = vrot.slane %v954_v51, 5  ;;  %v781_v24 = vld [vmem:[%s3870_s9 + $0x40] sm:$0xf] }
 0x1bb   : > { %v1331_v16 = vsel %vm1032_vm11, %v1302_v6, 0  ;;  %v987_v7 = vsel %vm3898_vm15, %v982_v13, %v986_v48  ;;  %v1261_v49 = vsel %vm3877_vm14, %v1259_v35, %v1260_v11  ;;  %v960_v3 = vshll.u32 %v783_v4, 16  ;;  %v794_v12 = vld [vmem:[%s3870_s9 + $0x38] sm:$0x1]  ;;  %v778_v13 = vld [vmem:[%s3870_s9 + $0x30] sm:$0xf] }
 0x1bc   : > { %1333 = vmatpush.bf16.xpose.msra.mxu2 %v1331_v16  ;;  %v997_v22 = vsel %vm3898_vm15, %v992_v17, %v996_v0  ;;  %v1022_v23 = vunpack.c.l.b16 %v987_v7  ;;  %v1292_v26 = vunpack.c.l.b16 %v1261_v49  ;;  %v964_v28 = vshrl.u32 %v783_v4, 16 }
 0x1bd   : > { %v1023_v30 = vunpack.c.l.b16 %v997_v22  ;;  %v957_v31 = vor.u32 %v956_v21, %v953_v18  ;;  %v962_v54 = vrot.slane %v960_v3, 5  ;;  %v970_v61 = vshll.u32 %v796_v44, 16 }
 0x1be   : > { %v1301_v32 = vpack.c.b16 %v1292_v26, %v1291_v14  ;;  %v966_v25 = vrot.slane %v964_v28, 4  ;;  %v1456_v33 = vsel %vm1032_vm11, %v3105_v19, 0  ;;  %v3917_v36 = vsel %vm1032_vm11, %v3089_v20, 0  ;;  %v779_v19 = vld [vmem:[%s3870_s9 + $0x34] sm:$0xf] }
 0x1bf   : > { %v1031_v38 = vpack.c.b16 %v1023_v30, %v1022_v23  ;;  %v958_v1 = vrot.slane %v957_v31, 4  ;;  %v972_v39 = vrot.slane %v970_v61, 5  ;;  %1462 = vmatpush.bf16.xpose.msra.mxu3 %v1456_v33  ;;  %v2826_v42 = vrot.slane %v1186_v29, 9  ;;  %v3103_v61 = vld [vmem:[%s3870_s9 + $0x3c] sm:$0xff] }
 0x1c0   : > { %v1328_v40 = vsel %vm1032_vm11, %v1301_v32, 0  ;;  %v967_v43 = vor.u32 %v966_v25, %v962_v54  ;;  %v1250_v45 = vrot.slane %v781_v24, 5  ;;  %v1253_v47 = vrot.slane %v795_v10, 5 }
 0x1c1   : > { %v1061_v41 = vsel %vm1032_vm11, %v1031_v38, 0  ;;  %v963_v48 = vsel %vm3898_vm15, %v958_v1, %v962_v54  ;;  %v927_v52 = vshrl.u32 %v780_v37, 16  ;;  %v930_v53 = vshll.u32 %v780_v37, 16 }
 0x1c2   : > { %1063 = vmatpush.bf16.xpose.msra.mxu0 %v1061_v41  ;;  %v968_v44 = vrot.slane %v967_v43, 4  ;;  %v1020_v55 = vunpack.c.l.b16 %v963_v48  ;;  %v1251_v56 = vsel %vm3877_vm14, %v2826_v42, %v1250_v45  ;;  %v1252_v57 = vrot.slane %v1250_v45, 4  ;;  %1164 = vmatpush.bf16.xpose.msra.mxu1 %v1154_v5  ;;  %v1184_v42 = vld [vmem:[%s3870_s9 + $0x24] sm:$0xe] }
 0x1c3   : > { %v1289_v59 = vunpack.c.l.b16 %v1251_v56  ;;  %v929_v62 = vrot.slane %v927_v52, 4  ;;  %v932_v63 = vrot.slane %v930_v53, 5  ;;  %v936_v0 = vshll.u32 %v781_v24, 16  ;;  %v776_v41 = vld [vmem:[%s3870_s9 + $0x24] sm:$0xf] }
 0x1c4   : > { %1334 = vmatpush.bf16.xpose.msra.mxu2 %v1328_v40  ;;  %v973_v2 = vsel %vm3898_vm15, %v968_v44, %v972_v39  ;;  %v1254_v4 = vsel %vm3877_vm14, %v1252_v57, %v1253_v47  ;;  %v940_v60 = vshrl.u32 %v781_v24, 16  ;;  %v946_v34 = vshll.u32 %v795_v10, 16  ;;  %v3087_v10 = vld [vmem:[%s3870_s9 + $0x18] sm:$0xff]  ;;  %v793_v47 = vld [vmem:[%s3870_s9 + $0x2c] sm:$0x1] }
 0x1c5   : > { %v1021_v6 = vunpack.c.l.b16 %v973_v2  ;;  %v1290_v9 = vunpack.c.l.b16 %v1254_v4  ;;  %v933_v11 = vor.u32 %v932_v63, %v929_v62  ;;  %v938_v5 = vrot.slane %v936_v0, 5 }
 0x1c6   : > { %v942_v15 = vrot.slane %v940_v60, 4  ;;  %v948_v35 = vrot.slane %v946_v34, 5  ;;  %v1453_v51 = vsel %vm1032_vm11, %v3104_v58, 0  ;;  %v3938_v16 = vsel %vm1032_vm11, %v3088_v46, 0  ;;  %v777_v58 = vld [vmem:[%s3870_s9 + $0x28] sm:$0xf] }
 0x1c7   : > { %v1030_v17 = vpack.c.b16 %v1021_v6, %v1020_v55  ;;  %v1300_v14 = vpack.c.b16 %v1290_v9, %v1289_v59  ;;  %v934_v18 = vrot.slane %v933_v11, 4  ;;  %1463 = vmatpush.bf16.xpose.msra.mxu3 %v1453_v51  ;;  %v2825_v20 = vrot.slane %v1185_v50, 9 }
 0x1c8   : > { %v943_v7 = vor.u32 %v942_v15, %v938_v5  ;;  %v1243_v49 = vrot.slane %v779_v19, 5  ;;  %v1246_v21 = vrot.slane %v794_v12, 5  ;;  %v903_v3 = vshrl.u32 %v778_v13, 16 }
 0x1c9   : > { %v1058_v22 = vsel %vm1032_vm11, %v1030_v17, 0  ;;  %v1325_v23 = vsel %vm1032_vm11, %v1300_v14, 0  ;;  %v939_v26 = vsel %vm3898_vm15, %v934_v18, %v938_v5  ;;  %v906_v28 = vshll.u32 %v778_v13, 16  ;;  %v3102_v5 = vld [vmem:[%s3870_s9 + $0x30] sm:$0xff] }
 0x1ca   : > { %1064 = vmatpush.bf16.xpose.msra.mxu0 %v1058_v22  ;;  %v944_v29 = vrot.slane %v943_v7, 4  ;;  %v1018_v30 = vunpack.c.l.b16 %v939_v26  ;;  %v1244_v31 = vsel %vm3877_vm14, %v2825_v20, %v1243_v49  ;;  %v1245_v54 = vrot.slane %v1243_v49, 4  ;;  %1165 = vmatpush.bf16.xpose.msra.mxu1 %v3917_v36  ;;  %v1183_v20 = vld [vmem:[%s3870_s9 + $0x18] sm:$0xe] }
 0x1cb   : > { %v1287_v32 = vunpack.c.l.b16 %v1244_v31  ;;  %v905_v25 = vrot.slane %v903_v3, 4  ;;  %v908_v33 = vrot.slane %v906_v28, 5  ;;  %v912_v37 = vshll.u32 %v779_v19, 16  ;;  %v792_v3 = vld [vmem:[%s3870_s9 + $0x20] sm:$0x1] }
 0x1cc   : > { %1335 = vmatpush.bf16.xpose.msra.mxu2 %v1325_v23  ;;  %v949_v38 = vsel %vm3898_vm15, %v944_v29, %v948_v35  ;;  %v1247_v1 = vsel %vm3877_vm14, %v1245_v54, %v1246_v21  ;;  %v916_v39 = vshrl.u32 %v779_v19, 16  ;;  %v922_v24 = vshll.u32 %v794_v12, 16  ;;  %v3086_v12 = vld [vmem:[%s3870_s9 + $0xc] sm:$0xff]  ;;  %v774_v22 = vld [vmem:[%s3870_s9 + $0x18] sm:$0xf] }
 0x1cd   : > { %v1019_v40 = vunpack.c.l.b16 %v949_v38  ;;  %v1288_v43 = vunpack.c.l.b16 %v1247_v1  ;;  %v909_v45 = vor.u32 %v908_v33, %v905_v25  ;;  %v914_v36 = vrot.slane %v912_v37, 5 }
 0x1ce   : > { %v918_v48 = vrot.slane %v916_v39, 4  ;;  %v924_v52 = vrot.slane %v922_v24, 5  ;;  %v1450_v53 = vsel %vm1032_vm11, %v3103_v61, 0  ;;  %v3959_v44 = vsel %vm1032_vm11, %v3087_v10, 0  ;;  %v775_v61 = vld [vmem:[%s3870_s9 + $0x1c] sm:$0xf] }
 0x1cf   : > { %v1029_v55 = vpack.c.b16 %v1019_v40, %v1018_v30  ;;  %v1299_v56 = vpack.c.b16 %v1288_v43, %v1287_v32  ;;  %v910_v57 = vrot.slane %v909_v45, 4  ;;  %1464 = vmatpush.bf16.xpose.msra.mxu3 %v1450_v53  ;;  %v2824_v46 = vrot.slane %v1184_v42, 9 }
 0x1d0   : > { %v919_v59 = vor.u32 %v918_v48, %v914_v36  ;;  %v1236_v62 = vrot.slane %v777_v58, 5  ;;  %v1239_v63 = vrot.slane %v793_v47, 5  ;;  %v879_v0 = vshrl.u32 %v776_v41, 16 }
 0x1d1   : > { %v1055_v2 = vsel %vm1032_vm11, %v1029_v55, 0  ;;  %v1322_v4 = vsel %vm1032_vm11, %v1299_v56, 0  ;;  %v915_v60 = vsel %vm3898_vm15, %v910_v57, %v914_v36  ;;  %v882_v34 = vshll.u32 %v776_v41, 16  ;;  %v3101_v36 = vld [vmem:[%s3870_s9 + $0x24] sm:$0xff] }
 0x1d2   : > { %1065 = vmatpush.bf16.xpose.msra.mxu0 %v1055_v2  ;;  %v920_v50 = vrot.slane %v919_v59, 4  ;;  %v1016_v6 = vunpack.c.l.b16 %v915_v60  ;;  %v1237_v9 = vsel %vm3877_vm14, %v2824_v46, %v1236_v62  ;;  %v1238_v11 = vrot.slane %v1236_v62, 4  ;;  %1166 = vmatpush.bf16.xpose.msra.mxu1 %v3938_v16  ;;  %v1182_v46 = vld [vmem:[%s3870_s9 + $0xc] sm:$0xe]  ;;  %v2940_v2 = vld [vmem:[%s3870_s9 + $0x60] sm:$0xe] }
 0x1d3   : > { %v1285_v13 = vunpack.c.l.b16 %v1237_v9  ;;  %v881_v15 = vrot.slane %v879_v0, 4  ;;  %v884_v35 = vrot.slane %v882_v34, 5  ;;  %v888_v51 = vshll.u32 %v777_v58, 16  ;;  %v3998_v0 = vld [vmem:[%s3870_s9 + $0x14] sm:$0x1] }
 0x1d4   : > { %1336 = vmatpush.bf16.xpose.msra.mxu2 %v1322_v4  ;;  %v925_v17 = vsel %vm3898_vm15, %v920_v50, %v924_v52  ;;  %v1240_v14 = vsel %vm3877_vm14, %v1238_v11, %v1239_v63  ;;  %v892_v18 = vshrl.u32 %v777_v58, 16  ;;  %v898_v19 = vshll.u32 %v793_v47, 16  ;;  %v3085_v47 = vld [vmem:[%s3870_s9] sm:$0xff] }
 0x1d5   : > { %v1017_v7 = vunpack.c.l.b16 %v925_v17  ;;  %v1286_v49 = vunpack.c.l.b16 %v1240_v14  ;;  %v885_v21 = vor.u32 %v884_v35, %v881_v15  ;;  %v890_v16 = vrot.slane %v888_v51, 5  ;;  %v4011_v17 = vld [vmem:[%s3870_s9 + $0x68] sm:$0x1] }
 0x1d6   : > { %v894_v23 = vrot.slane %v892_v18, 4  ;;  %v900_v26 = vrot.slane %v898_v19, 5  ;;  %v1447_v28 = vsel %vm1032_vm11, %v3102_v5, 0  ;;  %v3980_v29 = vsel %vm1032_vm11, %v3086_v12, 0  ;;  %v773_v12 = vld [vmem:[%s3870_s9 + $0x10] sm:$0xf] }
 0x1d7   : > { %v1028_v30 = vpack.c.b16 %v1017_v7, %v1016_v6  ;;  %v1298_v31 = vpack.c.b16 %v1286_v49, %v1285_v13  ;;  %v886_v54 = vrot.slane %v885_v21, 4  ;;  %1465 = vmatpush.bf16.xpose.msra.mxu3 %v1447_v28  ;;  %v2823_v10 = vrot.slane %v1183_v20, 9  ;;  %v4006_v6 = vld [vmem:[%s3870_s9 + $0x64] sm:$0xf]  ;;  %v772_v49 = vld [vmem:[%s3870_s9 + $0xc] sm:$0xf] }
 0x1d8   : > { %v895_v32 = vor.u32 %v894_v23, %v890_v16  ;;  %v1229_v25 = vrot.slane %v775_v61, 5  ;;  %v1232_v33 = vrot.slane %v792_v3, 5  ;;  %v855_v37 = vshrl.u32 %v774_v22, 16 }
 0x1d9   : > { %v1052_v38 = vsel %vm1032_vm11, %v1028_v30, 0  ;;  %v1319_v1 = vsel %vm1032_vm11, %v1298_v31, 0  ;;  %v891_v39 = vsel %vm3898_vm15, %v886_v54, %v890_v16  ;;  %v858_v24 = vshll.u32 %v774_v22, 16 }
 0x1da   : > { %1066 = vmatpush.bf16.xpose.msra.mxu0 %v1052_v38  ;;  %v896_v42 = vrot.slane %v895_v32, 4  ;;  %v1014_v40 = vunpack.c.l.b16 %v891_v39  ;;  %v1230_v43 = vsel %vm3877_vm14, %v2823_v10, %v1229_v25  ;;  %v1231_v45 = vrot.slane %v1229_v25, 4  ;;  %1167 = vmatpush.bf16.xpose.msra.mxu1 %v3959_v44 }
 0x1db   : > { %v1283_v41 = vunpack.c.l.b16 %v1230_v43  ;;  %v857_v48 = vrot.slane %v855_v37, 4  ;;  %v860_v52 = vrot.slane %v858_v24, 5  ;;  %v864_v53 = vshll.u32 %v775_v61, 16 }
 0x1dc   : > { %1337 = vmatpush.bf16.xpose.msra.mxu2 %v1319_v1  ;;  %v901_v55 = vsel %vm3898_vm15, %v896_v42, %v900_v26  ;;  %v1233_v56 = vsel %vm3877_vm14, %v1231_v45, %v1232_v33  ;;  %v868_v57 = vshrl.u32 %v775_v61, 16  ;;  %v874_v58 = vshll.u32 %v792_v3, 16  ;;  %v4033_v42 = vld [vmem:[%s3870_s9 + $0x58] sm:$0xf] }
 0x1dd   : > { %v1015_v59 = vunpack.c.l.b16 %v901_v55  ;;  %v1284_v62 = vunpack.c.l.b16 %v1233_v56  ;;  %v861_v44 = vor.u32 %v860_v52, %v857_v48  ;;  %v866_v63 = vrot.slane %v864_v53, 5  ;;  %v1181_v48 = vld [vmem:[%s3870_s9] sm:$0xe] }
 0x1de   : > { %v870_v4 = vrot.slane %v868_v57, 4  ;;  %v876_v60 = vrot.slane %v874_v58, 5  ;;  %v1444_v34 = vsel %vm1032_vm11, %v3101_v36, 0  ;;  %v4003_v50 = vsel %vm1032_vm11, %v3085_v47, 0  ;;  %v771_v47 = vld [vmem:[%s3870_s9 + $0x4] sm:$0xf] }
 0x1df   : > { %v1027_v9 = vpack.c.b16 %v1015_v59, %v1014_v40  ;;  %v1297_v11 = vpack.c.b16 %v1284_v62, %v1283_v41  ;;  %v862_v5 = vrot.slane %v861_v44, 4  ;;  %1466 = vmatpush.bf16.xpose.msra.mxu3 %v1444_v34  ;;  %v2822_v13 = vrot.slane %v1182_v46, 9  ;;  %v790_v41 = vld [vmem:[%s3870_s9 + $0x8] sm:$0x1]  ;;  %v2939_v57 = vld [vmem:[%s3870_s9 + $0x54] sm:$0xe] }
 0x1e0   : > { %v871_v15 = vor.u32 %v870_v4, %v866_v63  ;;  %v1222_v35 = vrot.slane %v773_v12, 5  ;;  %v1225_v51 = vrot.slane %v3998_v0, 5  ;;  %v2948_v14 = vrot.slane %v2940_v2, 9  ;;  %v4044_v44 = vld [vmem:[%s3870_s9 + $0x5c] sm:$0x1] }
 0x1e1   : > { %v1049_v18 = vsel %vm1032_vm11, %v1027_v9, 0  ;;  %v1316_v19 = vsel %vm1032_vm11, %v1297_v11, 0  ;;  %v867_v20 = vsel %vm3898_vm15, %v862_v5, %v866_v63  ;;  %v1880_v7 = vrot.slane %v4006_v6, 5  ;;  %v3120_v5 = vld [vmem:[%s3870_s9 + $0x6c] sm:$0xff] }
 0x1e2   : > { %1067 = vmatpush.bf16.xpose.msra.mxu0 %v1049_v18  ;;  %v872_v21 = vrot.slane %v871_v15, 4  ;;  %v1012_v16 = vunpack.c.l.b16 %v867_v20  ;;  %v1223_v3 = vsel %vm3877_vm14, %v2822_v13, %v1222_v35  ;;  %v1224_v22 = vrot.slane %v1222_v35, 4  ;;  %1168 = vmatpush.bf16.xpose.msra.mxu1 %v3980_v29  ;;  %v3100_v29 = vld [vmem:[%s3870_s9 + $0x18] sm:$0xff] }
 0x1e3   : > { %v1281_v23 = vunpack.c.l.b16 %v1223_v3  ;;  %v1881_v26 = vsel %vm3877_vm14, %v2948_v14, %v1880_v7  ;;  %v1882_v28 = vrot.slane %v1880_v7, 4  ;;  %v1883_v30 = vrot.slane %v4011_v17, 5 }
 0x1e4   : > { %1338 = vmatpush.bf16.xpose.msra.mxu2 %v1316_v19  ;;  %v877_v31 = vsel %vm3898_vm15, %v872_v21, %v876_v60  ;;  %v1226_v54 = vsel %vm3877_vm14, %v1224_v22, %v1225_v51  ;;  %v1909_v61 = vunpack.c.l.b16 %v1881_v26  ;;  %v831_v10 = vshrl.u32 %v772_v49, 16  ;;  %v770_v19 = vld [vmem:[%s3870_s9] sm:$0xf] }
 0x1e5   : > { %v1013_v32 = vunpack.c.l.b16 %v877_v31  ;;  %v1282_v25 = vunpack.c.l.b16 %v1226_v54  ;;  %v1884_v33 = vsel %vm3877_vm14, %v1882_v28, %v1883_v30  ;;  %v834_v37 = vshll.u32 %v772_v49, 16  ;;  %v3099_v54 = vld [vmem:[%s3870_s9 + $0xc] sm:$0xff] }
 0x1e6   : > { %v1910_v38 = vunpack.c.l.b16 %v1884_v33  ;;  %v833_v1 = vrot.slane %v831_v10, 4  ;;  %v840_v39 = vshll.u32 %v773_v12, 16  ;;  %v844_v24 = vshrl.u32 %v773_v12, 16 }
 0x1e7   : > { %v1026_v40 = vpack.c.b16 %v1013_v32, %v1012_v16  ;;  %v1296_v43 = vpack.c.b16 %v1282_v25, %v1281_v23  ;;  %v836_v45 = vrot.slane %v834_v37, 5  ;;  %v850_v36 = vshll.u32 %v3998_v0, 16  ;;  %v2920_v25 = vld [vmem:[%s3870_s9 + $0x60] sm:$0xf] }
 0x1e8   : > { %v1918_v52 = vpack.c.b16 %v1910_v38, %v1909_v61  ;;  %v842_v53 = vrot.slane %v840_v39, 5  ;;  %v846_v55 = vrot.slane %v844_v24, 4  ;;  %v1441_v56 = vsel %vm1032_vm11, %v3100_v29, 0 }
 0x1e9   : > { %v1046_v58 = vsel %vm1032_vm11, %v1026_v40, 0  ;;  %v1313_v46 = vsel %vm1032_vm11, %v1296_v43, 0  ;;  %v837_v59 = vor.u32 %v836_v45, %v833_v1  ;;  %v852_v62 = vrot.slane %v850_v36, 5  ;;  %1467 = vmatpush.bf16.xpose.msra.mxu3 %v1441_v56  ;;  %v3040_v45 = vld [vmem:[%s3870_s9 + $0x6c] sm:$0xf] }
 0x1ea   : > { %1068 = vmatpush.bf16.xpose.msra.mxu0 %v1046_v58  ;;  %v1947_v63 = vsel %vm1032_vm11, %v1918_v52, 0  ;;  %v847_v0 = vor.u32 %v846_v55, %v842_v53  ;;  %v2821_v2 = vrot.slane %v1181_v48, 9  ;;  %v1215_v4 = vrot.slane %v771_v47, 5  ;;  %1169 = vmatpush.bf16.xpose.msra.mxu1 %v4003_v50 }
 0x1eb   : > { %v838_v60 = vrot.slane %v837_v59, 4  ;;  %v1218_v34 = vrot.slane %v790_v41, 5  ;;  %v2947_v9 = vrot.slane %v2939_v57, 9  ;;  %v1873_v11 = vrot.slane %v4033_v42, 5 }
 0x1ec   : > { %1339 = vmatpush.bf16.xpose.msra.mxu2 %v1313_v46  ;;  %v848_v12 = vrot.slane %v847_v0, 4  ;;  %v1216_v13 = vsel %vm3877_vm14, %v2821_v2, %v1215_v4  ;;  %v1217_v15 = vrot.slane %v1215_v4, 4  ;;  %v1876_v35 = vrot.slane %v4044_v44, 5  ;;  %v4076_v4 = vld [vmem:[%s3870_s9 + $0x70] sm:$0xf] }
 0x1ed   : > { %v843_v51 = vsel %vm3898_vm15, %v838_v60, %v842_v53  ;;  %v1279_v50 = vunpack.c.l.b16 %v1216_v13  ;;  %v1874_v14 = vsel %vm3877_vm14, %v2947_v9, %v1873_v11  ;;  %v1875_v18 = vrot.slane %v1873_v11, 4  ;;  %v4081_v9 = vld [vmem:[%s3870_s9 + $0x74] sm:$0x1] }
 0x1ee   : > { %v853_v20 = vsel %vm3898_vm15, %v848_v12, %v852_v62  ;;  %v1010_v7 = vunpack.c.l.b16 %v843_v51  ;;  %v1219_v49 = vsel %vm3877_vm14, %v1217_v15, %v1218_v34  ;;  %v1907_v21 = vunpack.c.l.b16 %v1874_v14  ;;  %v2938_v14 = vld [vmem:[%s3870_s9 + $0x48] sm:$0xe] }
 0x1ef   : > { %v1011_v16 = vunpack.c.l.b16 %v853_v20  ;;  %v1280_v3 = vunpack.c.l.b16 %v1219_v49  ;;  %v1877_v22 = vsel %vm3877_vm14, %v1875_v18, %v1876_v35  ;;  %v2075_v23 = vsel %vm1032_vm11, %v3120_v5, 0  ;;  %v3119_v49 = vld [vmem:[%s3870_s9 + $0x60] sm:$0xff] }
 0x1f0   : > { %v1908_v26 = vunpack.c.l.b16 %v1877_v22  ;;  %v807_v28 = vshrl.u32 %v770_v19, 16  ;;  %v810_v30 = vshll.u32 %v770_v19, 16  ;;  %v816_v31 = vshll.u32 %v771_v47, 16 }
 0x1f1   : > { %v1025_v61 = vpack.c.b16 %v1011_v16, %v1010_v7  ;;  %v1295_v10 = vpack.c.b16 %v1280_v3, %v1279_v50  ;;  %v820_v29 = vshrl.u32 %v771_v47, 16  ;;  %v826_v32 = vshll.u32 %v790_v41, 16 }
 0x1f2   : > { %1949 = vmatpush.bf16.xpose.msrb.mxu1 %v1947_v63  ;;  %v1917_v33 = vpack.c.b16 %v1908_v26, %v1907_v21  ;;  %v809_v37 = vrot.slane %v807_v28, 4  ;;  %v812_v38 = vrot.slane %v810_v30, 5  ;;  %v818_v1 = vrot.slane %v816_v31, 5  ;;  %v4095_v26 = vld [vmem:[%s3870_s9 + $0x50] sm:$0x1] }
 0x1f3   : > { %v1043_v39 = vsel %vm1032_vm11, %v1025_v61, 0  ;;  %v1310_v24 = vsel %vm1032_vm11, %v1295_v10, 0  ;;  %v822_v40 = vrot.slane %v820_v29, 4  ;;  %v828_v43 = vrot.slane %v826_v32, 5  ;;  %v2917_v61 = vld [vmem:[%s3870_s9 + $0x54] sm:$0xf] }
 0x1f4   : > { %1069 = vmatpush.bf16.xpose.msra.mxu0 %v1043_v39  ;;  %1340 = vmatpush.bf16.xpose.msra.mxu2 %v1310_v24  ;;  %v1944_v36 = vsel %vm1032_vm11, %v1917_v33, 0  ;;  %v813_v48 = vor.u32 %v812_v38, %v809_v37  ;;  %v1438_v47 = vsel %vm1032_vm11, %v3099_v54, 0  ;;  %v1682_v41 = vshrl.u32 %v2920_v25, 16 }
 0x1f5   : > { %v823_v52 = vor.u32 %v822_v40, %v818_v1  ;;  %v1685_v53 = vshll.u32 %v2920_v25, 16  ;;  %v1691_v55 = vshll.u32 %v4006_v6, 16  ;;  %v1695_v56 = vshrl.u32 %v4006_v6, 16  ;;  %1468 = vmatpush.bf16.xpose.msra.mxu3 %v1438_v47 }
 0x1f6   : > { %v814_v57 = vrot.slane %v813_v48, 4  ;;  %v1684_v58 = vrot.slane %v1682_v41, 4  ;;  %v1701_v46 = vshll.u32 %v4011_v17, 16  ;;  %v2298_v59 = vshrl.u32 %v3040_v45, 16 }
 0x1f7   : > { %v824_v62 = vrot.slane %v823_v52, 4  ;;  %v1687_v63 = vrot.slane %v1685_v53, 5  ;;  %v1693_v0 = vrot.slane %v1691_v55, 5  ;;  %v1697_v2 = vrot.slane %v1695_v56, 4  ;;  %v3037_v56 = vld [vmem:[%s3870_s9 + $0x60] sm:$0xf] }
 0x1f8   : > { %v819_v60 = vsel %vm3898_vm15, %v814_v57, %v818_v1  ;;  %v1703_v34 = vrot.slane %v1701_v46, 5  ;;  %v2300_v6 = vrot.slane %v2298_v59, 4  ;;  %v2301_v11 = vshll.u32 %v3040_v45, 16 }
 0x1f9   : > { %v829_v17 = vsel %vm3898_vm15, %v824_v62, %v828_v43  ;;  %v1008_v5 = vunpack.c.l.b16 %v819_v60  ;;  %v1688_v12 = vor.u32 %v1687_v63, %v1684_v58  ;;  %v1698_v13 = vor.u32 %v1697_v2, %v1693_v0  ;;  %v4120_v60 = vld [vmem:[%s3870_s9 + $0x64] sm:$0xf] }
 0x1fa   : > { %1950 = vmatpush.bf16.xpose.msrb.mxu1 %v1944_v36  ;;  %v1009_v15 = vunpack.c.l.b16 %v829_v17  ;;  %v2303_v35 = vrot.slane %v2301_v11, 5  ;;  %v2307_v51 = vshll.u32 %v4076_v4, 16  ;;  %v2311_v50 = vshrl.u32 %v4076_v4, 16 }
 0x1fb   : > { %v1689_v18 = vrot.slane %v1688_v12, 4  ;;  %v1699_v19 = vrot.slane %v1698_v13, 4  ;;  %v2317_v20 = vshll.u32 %v4081_v9, 16  ;;  %v2499_v7 = vrot.slane %v4081_v9, 5 }
 0x1fc   : > { %2077 = vmatpush.bf16.xpose.msrb.mxu2 %v2075_v23  ;;  %v1024_v21 = vpack.c.b16 %v1009_v15, %v1008_v5  ;;  %v2304_v16 = vor.u32 %v2303_v35, %v2300_v6  ;;  %v2309_v3 = vrot.slane %v2307_v51, 5  ;;  %v2313_v22 = vrot.slane %v2311_v50, 4  ;;  %v4092_v23 = vld [vmem:[%s3870_s9 + $0x4c] sm:$0xf]  ;;  %v4123_v35 = vld [vmem:[%s3870_s9 + $0x68] sm:$0x1] }
 0x1fd   : > { %v1694_v28 = vsel %vm3898_vm15, %v1689_v18, %v1693_v0  ;;  %v1704_v30 = vsel %vm3898_vm15, %v1699_v19, %v1703_v34  ;;  %v2319_v31 = vrot.slane %v2317_v20, 5  ;;  %v2946_v54 = vrot.slane %v2938_v14, 9  ;;  %v2937_v18 = vld [vmem:[%s3870_s9 + $0x3c] sm:$0xe]  ;;  %v3118_v19 = vld [vmem:[%s3870_s9 + $0x54] sm:$0xff] }
 0x1fe   : > { %v1040_v10 = vsel %vm1032_vm11, %v1024_v21, 0  ;;  %v1729_v29 = vunpack.c.l.b16 %v1694_v28  ;;  %v1730_v32 = vunpack.c.l.b16 %v1704_v30  ;;  %v2305_v25 = vrot.slane %v2304_v16, 4 }
 0x1ff   : > { %1070 = vmatpush.bf16.xpose.msra.mxu0 %v1040_v10  ;;  %v2314_v33 = vor.u32 %v2313_v22, %v2309_v3  ;;  %v1866_v37 = vrot.slane %v4092_v23, 5  ;;  %v1869_v38 = vrot.slane %v4095_v26, 5  ;;  %v2072_v1 = vsel %vm1032_vm11, %v3119_v49, 0 }
 0x200   : > { %v1738_v39 = vpack.c.b16 %v1730_v32, %v1729_v29  ;;  %v2310_v24 = vsel %vm3898_vm15, %v2305_v25, %v2309_v3  ;;  %v1658_v40 = vshrl.u32 %v2917_v61, 16  ;;  %v1661_v43 = vshll.u32 %v2917_v61, 16  ;;  %v4137_v3 = vld [vmem:[%s3870_s9 + $0x44] sm:$0x1]  ;;  %v2914_v32 = vld [vmem:[%s3870_s9 + $0x48] sm:$0xf] }
 0x201   : > { %v2315_v45 = vrot.slane %v2314_v33, 4  ;;  %v2345_v36 = vunpack.c.l.b16 %v2310_v24  ;;  %v1867_v48 = vsel %vm3877_vm14, %v2946_v54, %v1866_v37  ;;  %v1868_v47 = vrot.slane %v1866_v37, 4 }
 0x202   : > { %v1767_v41 = vsel %vm1032_vm11, %v1738_v39, 0  ;;  %v1905_v52 = vunpack.c.l.b16 %v1867_v48  ;;  %v1660_v53 = vrot.slane %v1658_v40, 4  ;;  %v1663_v55 = vrot.slane %v1661_v43, 5 }
 0x203   : > { %v2320_v57 = vsel %vm3898_vm15, %v2315_v45, %v2319_v31  ;;  %v1870_v58 = vsel %vm3877_vm14, %v1868_v47, %v1869_v38  ;;  %v1667_v46 = vshll.u32 %v4033_v42, 16  ;;  %v1671_v59 = vshrl.u32 %v4033_v42, 16  ;;  %v4126_v42 = vld [vmem:[%s3870_s9 + $0x40] sm:$0xf] }
 0x204   : > { %2078 = vmatpush.bf16.xpose.msrb.mxu2 %v2072_v1  ;;  %v2346_v62 = vunpack.c.l.b16 %v2320_v57  ;;  %v1906_v63 = vunpack.c.l.b16 %v1870_v58  ;;  %v1664_v0 = vor.u32 %v1663_v55, %v1660_v53  ;;  %v1677_v2 = vshll.u32 %v4044_v44, 16  ;;  %v3034_v55 = vld [vmem:[%s3870_s9 + $0x54] sm:$0xf] }
 0x205   : > { %v1669_v34 = vrot.slane %v1667_v46, 5  ;;  %v1673_v6 = vrot.slane %v1671_v59, 4  ;;  %v2274_v11 = vshrl.u32 %v3037_v56, 16  ;;  %v2277_v17 = vshll.u32 %v3037_v56, 16  ;;  %v3097_v59 = vld [vmem:[#allocation2 + $0x20] sm:$0xff] }
 0x206   : > { %v2354_v5 = vpack.c.b16 %v2346_v62, %v2345_v36  ;;  %v1916_v12 = vpack.c.b16 %v1906_v63, %v1905_v52  ;;  %v1665_v13 = vrot.slane %v1664_v0, 4  ;;  %v1679_v15 = vrot.slane %v1677_v2, 5  ;;  %v3095_v62 = vld [vmem:[#allocation2 + $0x10] sm:$0xff]  ;;  %2837 = vmatmul.msk.bf16.vlgmr.msra.gmra.mxu2 %vm1032_vm11, %v3097_v59 }
 0x207   : > { %1769 = vmatpush.bf16.xpose.msrb.mxu0 %v1767_v41  ;;  %v1674_v51 = vor.u32 %v1673_v6, %v1669_v34  ;;  %v2276_v50 = vrot.slane %v2274_v11, 4  ;;  %v2279_v44 = vrot.slane %v2277_v17, 5  ;;  %v2283_v14 = vshll.u32 %v4120_v60, 16  ;;  %v4159_v6 = vld [vmem:[%s3870_s9 + $0x58] sm:$0xf]  ;;  %v3107_v11 = vld [vmem:[#allocation2 + $0x30] sm:$0xff] }
 0x208   : > { %v2383_v20 = vsel %vm1032_vm11, %v2354_v5, 0  ;;  %v1941_v49 = vsel %vm1032_vm11, %v1916_v12, 0  ;;  %v1670_v21 = vsel %vm3898_vm15, %v1665_v13, %v1669_v34  ;;  %v2287_v16 = vshrl.u32 %v4120_v60, 16  ;;  %2777 = vmatmul.msk.bf16.vlgmr.msra.gmra.mxu0 %vm1032_vm11, %v3095_v62  ;;  %2897 = vmatmul.msk.bf16.vlgmr.msra.gmra.mxu3 %vm1032_vm11, %v3107_v11 }
 0x209   : > { %2385 = vmatpush.bf16.xpose.msrb.mxu3 %v2383_v20  ;;  %1951 = vmatpush.bf16.xpose.msrb.mxu1 %v1941_v49  ;;  %v1675_v22 = vrot.slane %v1674_v51, 4  ;;  %v1727_v28 = vunpack.c.l.b16 %v1670_v21  ;;  %v2280_v30 = vor.u32 %v2279_v44, %v2276_v50  ;;  %v2285_v31 = vrot.slane %v2283_v14, 5  ;;  %v4164_v51 = vld [vmem:[%s3870_s9 + $0x5c] sm:$0x1]  ;;  %v2936_v49 = vld [vmem:[%s3870_s9 + $0x30] sm:$0xe] }
 0x20a   : > { %v2289_v54 = vrot.slane %v2287_v16, 4  ;;  %v2293_v61 = vshll.u32 %v4123_v35, 16  ;;  %v2945_v10 = vrot.slane %v2937_v18, 9  ;;  %v1859_v29 = vrot.slane %v4126_v42, 5 }
 0x20b   : > { %v1680_v25 = vsel %vm3898_vm15, %v1675_v22, %v1679_v15  ;;  %v2281_v33 = vrot.slane %v2280_v30, 4  ;;  %v1862_v37 = vrot.slane %v4137_v3, 5  ;;  %v2069_v38 = vsel %vm1032_vm11, %v3118_v19, 0  ;;  %v4175_v30 = vld [vmem:[%s3870_s9 + $0x38] sm:$0x1] }
 0x20c   : > { %v1728_v1 = vunpack.c.l.b16 %v1680_v25  ;;  %v2290_v39 = vor.u32 %v2289_v54, %v2285_v31  ;;  %v2295_v24 = vrot.slane %v2293_v61, 5  ;;  %v1860_v40 = vsel %vm3877_vm14, %v2945_v10, %v1859_v29  ;;  %2079 = vmatpush.bf16.xpose.msrb.mxu2 %v2069_v38 }
 0x20d   : > { %v2286_v43 = vsel %vm3898_vm15, %v2281_v33, %v2285_v31  ;;  %v1861_v45 = vrot.slane %v1859_v29, 4  ;;  %v1903_v36 = vunpack.c.l.b16 %v1860_v40  ;;  %v1634_v48 = vshrl.u32 %v2914_v32, 16  ;;  %v3117_v29 = vld [vmem:[%s3870_s9 + $0x48] sm:$0xff]  ;;  %v2911_v40 = vld [vmem:[%s3870_s9 + $0x3c] sm:$0xf] }
 0x20e   : > { %v1737_v47 = vpack.c.b16 %v1728_v1, %v1727_v28  ;;  %v2291_v41 = vrot.slane %v2290_v39, 4  ;;  %v2343_v52 = vunpack.c.l.b16 %v2286_v43  ;;  %v1637_v53 = vshll.u32 %v2914_v32, 16 }
 0x20f   : > { %v1863_v56 = vsel %vm3877_vm14, %v1861_v45, %v1862_v37  ;;  %v1636_v57 = vrot.slane %v1634_v48, 4  ;;  %v1643_v58 = vshll.u32 %v4092_v23, 16  ;;  %v1647_v46 = vshrl.u32 %v4092_v23, 16 }
 0x210   : > { %v1764_v63 = vsel %vm1032_vm11, %v1737_v47, 0  ;;  %v2296_v0 = vsel %vm3898_vm15, %v2291_v41, %v2295_v24  ;;  %v1904_v2 = vunpack.c.l.b16 %v1863_v56  ;;  %v1639_v34 = vrot.slane %v1637_v53, 5 }
 0x211   : > { %1770 = vmatpush.bf16.xpose.msrb.mxu0 %v1764_v63  ;;  %v2344_v17 = vunpack.c.l.b16 %v2296_v0  ;;  %v1645_v5 = vrot.slane %v1643_v58, 5  ;;  %v1649_v12 = vrot.slane %v1647_v46, 4  ;;  %v1653_v23 = vshll.u32 %v4095_v26, 16  ;;  %v4170_v26 = vld [vmem:[%s3870_s9 + $0x34] sm:$0xf] }
 0x212   : > { %v1915_v13 = vpack.c.b16 %v1904_v2, %v1903_v36  ;;  %v1640_v15 = vor.u32 %v1639_v34, %v1636_v57  ;;  %v2250_v50 = vshrl.u32 %v3034_v55, 16  ;;  %v2253_v44 = vshll.u32 %v3034_v55, 16  ;;  %v3031_v0 = vld [vmem:[%s3870_s9 + $0x48] sm:$0xf]  ;;  %v3093_v2 = vld [vmem:[#allocation2] sm:$0xff] }
 0x213   : > { %v2353_v14 = vpack.c.b16 %v2344_v17, %v2343_v52  ;;  %v1650_v18 = vor.u32 %v1649_v12, %v1645_v5  ;;  %v1655_v19 = vrot.slane %v1653_v23, 5  ;;  %v2259_v20 = vshll.u32 %v4159_v6, 16  ;;  %2819 = vmatmul.msk.bf16.vlgmr.msra.gmra.mxu1 %vm1032_vm11, %v3093_v2 }
 0x214   : > { %v1938_v21 = vsel %vm1032_vm11, %v1915_v13, 0  ;;  %v1641_v16 = vrot.slane %v1640_v15, 4  ;;  %v2252_v22 = vrot.slane %v2250_v50, 4  ;;  %v2255_v28 = vrot.slane %v2253_v44, 5  ;;  %v4203_v50 = vld [vmem:[%s3870_s9 + $0x4c] sm:$0xf] }
 0x215   : > { %v2380_v31 = vsel %vm1032_vm11, %v2353_v14, 0  ;;  %1952 = vmatpush.bf16.xpose.msrb.mxu1 %v1938_v21  ;;  %v1651_v54 = vrot.slane %v1650_v18, 4  ;;  %v2261_v61 = vrot.slane %v2259_v20, 5  ;;  %v2263_v10 = vshrl.u32 %v4159_v6, 16 }
 0x216   : > { %2386 = vmatpush.bf16.xpose.msrb.mxu3 %v2380_v31  ;;  %v1646_v32 = vsel %vm3898_vm15, %v1641_v16, %v1645_v5  ;;  %v2256_v25 = vor.u32 %v2255_v28, %v2252_v22  ;;  %v2269_v33 = vshll.u32 %v4164_v51, 16  ;;  %v2944_v37 = vrot.slane %v2936_v49, 9 }
 0x217   : > { %v1656_v38 = vsel %vm3898_vm15, %v1651_v54, %v1655_v19  ;;  %v1725_v1 = vunpack.c.l.b16 %v1646_v32  ;;  %v2265_v39 = vrot.slane %v2263_v10, 4  ;;  %v1852_v24 = vrot.slane %v4170_v26, 5  ;;  %v4207_v19 = vld [vmem:[%s3870_s9 + $0x50] sm:$0x1] }
 0x218   : > { %v1726_v43 = vunpack.c.l.b16 %v1656_v38  ;;  %v2257_v45 = vrot.slane %v2256_v25, 4  ;;  %v2271_v36 = vrot.slane %v2269_v33, 5  ;;  %v1855_v48 = vrot.slane %v4175_v30, 5  ;;  %v4217_v33 = vld [vmem:[%s3870_s9 + $0x2c] sm:$0x1] }
 0x219   : > { %v2266_v47 = vor.u32 %v2265_v39, %v2261_v61  ;;  %v1853_v41 = vsel %vm3877_vm14, %v2944_v37, %v1852_v24  ;;  %v1854_v52 = vrot.slane %v1852_v24, 4  ;;  %v2066_v53 = vsel %vm1032_vm11, %v3117_v29, 0  ;;  %v3116_v37 = vld [vmem:[%s3870_s9 + $0x3c] sm:$0xff] }
 0x21a   : > { %v1736_v55 = vpack.c.b16 %v1726_v43, %v1725_v1  ;;  %v2262_v56 = vsel %vm3898_vm15, %v2257_v45, %v2261_v61  ;;  %v1901_v57 = vunpack.c.l.b16 %v1853_v41  ;;  %2080 = vmatpush.bf16.xpose.msrb.mxu2 %v2066_v53  ;;  %v1610_v58 = vshrl.u32 %v2911_v40, 16  ;;  %v4213_v61 = vld [vmem:[%s3870_s9 + $0x28] sm:$0xf] }
 0x21b   : > { %v2267_v46 = vrot.slane %v2266_v47, 4  ;;  %v2341_v59 = vunpack.c.l.b16 %v2262_v56  ;;  %v1856_v62 = vsel %vm3877_vm14, %v1854_v52, %v1855_v48  ;;  %v1613_v63 = vshll.u32 %v2911_v40, 16  ;;  %v2908_v48 = vld [vmem:[%s3870_s9 + $0x30] sm:$0xf] }
 0x21c   : > { %v1761_v34 = vsel %vm1032_vm11, %v1736_v55, 0  ;;  %v1902_v11 = vunpack.c.l.b16 %v1856_v62  ;;  %v1612_v17 = vrot.slane %v1610_v58, 4  ;;  %v1619_v5 = vshll.u32 %v4126_v42, 16 }
 0x21d   : > { %1771 = vmatpush.bf16.xpose.msrb.mxu0 %v1761_v34  ;;  %v2272_v12 = vsel %vm3898_vm15, %v2267_v46, %v2271_v36  ;;  %v1615_v23 = vrot.slane %v1613_v63, 5  ;;  %v1623_v13 = vshrl.u32 %v4126_v42, 16  ;;  %v1629_v15 = vshll.u32 %v4137_v3, 16  ;;  %v2935_v42 = vld [vmem:[%s3870_s9 + $0x24] sm:$0xe] }
 0x21e   : > { %v2342_v44 = vunpack.c.l.b16 %v2272_v12  ;;  %v1914_v14 = vpack.c.b16 %v1902_v11, %v1901_v57  ;;  %v1621_v18 = vrot.slane %v1619_v5, 5  ;;  %v2226_v20 = vshrl.u32 %v3031_v0, 16 }
 0x21f   : > { %v1616_v49 = vor.u32 %v1615_v23, %v1612_v17  ;;  %v1625_v21 = vrot.slane %v1623_v13, 4  ;;  %v1631_v16 = vrot.slane %v1629_v15, 5  ;;  %v2229_v22 = vshll.u32 %v3031_v0, 16  ;;  %v3028_v13 = vld [vmem:[%s3870_s9 + $0x3c] sm:$0xf] }
 0x220   : > { %v2352_v28 = vpack.c.b16 %v2342_v44, %v2341_v59  ;;  %v1935_v3 = vsel %vm1032_vm11, %v1914_v14, 0  ;;  %v2228_v31 = vrot.slane %v2226_v20, 4  ;;  %v2235_v54 = vshll.u32 %v4203_v50, 16  ;;  %v4241_v20 = vld [vmem:[%s3870_s9 + $0x40] sm:$0xf] }
 0x221   : > { %1953 = vmatpush.bf16.xpose.msrb.mxu1 %v1935_v3  ;;  %v1617_v10 = vrot.slane %v1616_v49, 4  ;;  %v1626_v29 = vor.u32 %v1625_v21, %v1621_v18  ;;  %v2231_v32 = vrot.slane %v2229_v22, 5  ;;  %v2239_v25 = vshrl.u32 %v4203_v50, 16  ;;  %v3098_v49 = vld [vmem:[#allocation2 + $0x28] sm:$0xff]  ;;  %v3108_v3 = vld [vmem:[#allocation2 + $0x38] sm:$0xff] }
 0x222   : > { %v2377_v38 = vsel %vm1032_vm11, %v2352_v28, 0  ;;  %v2237_v1 = vrot.slane %v2235_v54, 5  ;;  %v2245_v39 = vshll.u32 %v4207_v19, 16  ;;  %v2943_v24 = vrot.slane %v2935_v42, 9  ;;  %v3096_v28 = vld [vmem:[#allocation2 + $0x18] sm:$0xff]  ;;  %2838 = vmatmul.msk.bf16.gmra.mxu2 %vm1032_vm11, %v3098_v49  ;;  %2898 = vmatmul.msk.bf16.gmra.mxu3 %vm1032_vm11, %v3108_v3 }
 0x223   : > { %2387 = vmatpush.bf16.xpose.msrb.mxu3 %v2377_v38  ;;  %v1622_v40 = vsel %vm3898_vm15, %v1617_v10, %v1621_v18  ;;  %v1627_v43 = vrot.slane %v1626_v29, 4  ;;  %v2232_v45 = vor.u32 %v2231_v32, %v2228_v31  ;;  %v2241_v36 = vrot.slane %v2239_v25, 4  ;;  %v4247_v29 = vld [vmem:[%s3870_s9 + $0x44] sm:$0x1]  ;;  %2778 = vmatmul.msk.bf16.gmra.mxu0 %vm1032_vm11, %v3096_v28 }
 0x224   : > { %v1723_v47 = vunpack.c.l.b16 %v1622_v40  ;;  %v2247_v41 = vrot.slane %v2245_v39, 5  ;;  %v1845_v52 = vrot.slane %v4213_v61, 5  ;;  %v1848_v53 = vrot.slane %v4217_v33, 5 }
 0x225   : > { %v1632_v55 = vsel %vm3898_vm15, %v1627_v43, %v1631_v16  ;;  %v2233_v56 = vrot.slane %v2232_v45, 4  ;;  %v2242_v57 = vor.u32 %v2241_v36, %v2237_v1  ;;  %v2063_v58 = vsel %vm1032_vm11, %v3116_v37, 0  ;;  %v3115_v45 = vld [vmem:[%s3870_s9 + $0x30] sm:$0xff] }
 0x226   : > { %v1724_v46 = vunpack.c.l.b16 %v1632_v55  ;;  %v1846_v59 = vsel %vm3877_vm14, %v2943_v24, %v1845_v52  ;;  %v1847_v62 = vrot.slane %v1845_v52, 4  ;;  %2081 = vmatpush.bf16.xpose.msrb.mxu2 %v2063_v58  ;;  %v1586_v63 = vshrl.u32 %v2908_v48, 16  ;;  %v4262_v52 = vld [vmem:[%s3870_s9 + $0x20] sm:$0x1]  ;;  %v2905_v58 = vld [vmem:[%s3870_s9 + $0x24] sm:$0xf] }
 0x227   : > { %v2238_v0 = vsel %vm3898_vm15, %v2233_v56, %v2237_v1  ;;  %v2243_v2 = vrot.slane %v2242_v57, 4  ;;  %v1899_v34 = vunpack.c.l.b16 %v1846_v59  ;;  %v1589_v11 = vshll.u32 %v2908_v48, 16  ;;  %v4251_v1 = vld [vmem:[%s3870_s9 + $0x1c] sm:$0xf] }
 0x228   : > { %v1735_v17 = vpack.c.b16 %v1724_v46, %v1723_v47  ;;  %v2339_v5 = vunpack.c.l.b16 %v2238_v0  ;;  %v1849_v12 = vsel %vm3877_vm14, %v1847_v62, %v1848_v53  ;;  %v1588_v23 = vrot.slane %v1586_v63, 4 }
 0x229   : > { %v2248_v15 = vsel %vm3898_vm15, %v2243_v2, %v2247_v41  ;;  %v1900_v44 = vunpack.c.l.b16 %v1849_v12  ;;  %v1591_v14 = vrot.slane %v1589_v11, 5  ;;  %v1595_v18 = vshll.u32 %v4170_v26, 16 }
 0x22a   : > { %v1758_v21 = vsel %vm1032_vm11, %v1735_v17, 0  ;;  %v2340_v16 = vunpack.c.l.b16 %v2248_v15  ;;  %v1599_v22 = vshrl.u32 %v4170_v26, 16  ;;  %v1605_v42 = vshll.u32 %v4175_v30, 16  ;;  %v2934_v30 = vld [vmem:[%s3870_s9 + $0x18] sm:$0xe] }
 0x22b   : > { %1772 = vmatpush.bf16.xpose.msrb.mxu0 %v1758_v21  ;;  %v1913_v31 = vpack.c.b16 %v1900_v44, %v1899_v34  ;;  %v1592_v54 = vor.u32 %v1591_v14, %v1588_v23  ;;  %v1597_v10 = vrot.slane %v1595_v18, 5  ;;  %v2202_v32 = vshrl.u32 %v3028_v13, 16 }
 0x22c   : > { %v2351_v25 = vpack.c.b16 %v2340_v16, %v2339_v5  ;;  %v1601_v37 = vrot.slane %v1599_v22, 4  ;;  %v1607_v38 = vrot.slane %v1605_v42, 5  ;;  %v2205_v26 = vshll.u32 %v3028_v13, 16 }
 0x22d   : > { %v1932_v39 = vsel %vm1032_vm11, %v1913_v31, 0  ;;  %v1593_v24 = vrot.slane %v1592_v54, 4  ;;  %v2204_v40 = vrot.slane %v2202_v32, 4  ;;  %v2211_v43 = vshll.u32 %v4241_v20, 16  ;;  %v3025_v31 = vld [vmem:[%s3870_s9 + $0x30] sm:$0xf] }
 0x22e   : > { %v2374_v36 = vsel %vm1032_vm11, %v2351_v25, 0  ;;  %1954 = vmatpush.bf16.xpose.msrb.mxu1 %v1932_v39  ;;  %v1602_v48 = vor.u32 %v1601_v37, %v1597_v10  ;;  %v2207_v47 = vrot.slane %v2205_v26, 5  ;;  %v2215_v41 = vshrl.u32 %v4241_v20, 16  ;;  %v4287_v39 = vld [vmem:[%s3870_s9 + $0x34] sm:$0xf] }
 0x22f   : > { %2388 = vmatpush.bf16.xpose.msrb.mxu3 %v2374_v36  ;;  %v1598_v53 = vsel %vm3898_vm15, %v1593_v24, %v1597_v10  ;;  %v2213_v55 = vrot.slane %v2211_v43, 5  ;;  %v2221_v56 = vshll.u32 %v4247_v29, 16  ;;  %v2942_v57 = vrot.slane %v2934_v30, 9  ;;  %v3094_v24 = vld [vmem:[#allocation2 + $0x8] sm:$0xff]  ;;  %v4290_v36 = vld [vmem:[%s3870_s9 + $0x38] sm:$0x1] }
 0x230   : > { %v1603_v46 = vrot.slane %v1602_v48, 4  ;;  %v1721_v59 = vunpack.c.l.b16 %v1598_v53  ;;  %v2208_v62 = vor.u32 %v2207_v47, %v2204_v40  ;;  %v2217_v63 = vrot.slane %v2215_v41, 4  ;;  %2820 = vmatmul.msk.bf16.gmra.mxu1 %vm1032_vm11, %v3094_v24 }
 0x231   : > { %v2223_v0 = vrot.slane %v2221_v56, 5  ;;  %v1838_v2 = vrot.slane %v4251_v1, 5  ;;  %v1841_v34 = vrot.slane %v4262_v52, 5  ;;  %v2060_v11 = vsel %vm1032_vm11, %v3115_v45, 0 }
 0x232   : > { %v1608_v17 = vsel %vm3898_vm15, %v1603_v46, %v1607_v38  ;;  %v2209_v5 = vrot.slane %v2208_v62, 4  ;;  %v2218_v12 = vor.u32 %v2217_v63, %v2213_v55  ;;  %2082 = vmatpush.bf16.xpose.msrb.mxu2 %v2060_v11  ;;  %v1562_v23 = vshrl.u32 %v2905_v58, 16  ;;  %v2933_v46 = vld [vmem:[%s3870_s9 + $0xc] sm:$0xe] }
 0x233   : > { %v1722_v13 = vunpack.c.l.b16 %v1608_v17  ;;  %v1839_v15 = vsel %vm3877_vm14, %v2942_v57, %v1838_v2  ;;  %v1840_v44 = vrot.slane %v1838_v2, 4  ;;  %v1565_v14 = vshll.u32 %v2905_v58, 16 }
 0x234   : > { %v2214_v18 = vsel %vm3898_vm15, %v2209_v5, %v2213_v55  ;;  %v2219_v49 = vrot.slane %v2218_v12, 4  ;;  %v1897_v21 = vunpack.c.l.b16 %v1839_v15  ;;  %v1564_v16 = vrot.slane %v1562_v23, 4  ;;  %v4293_v55 = vld [vmem:[%s3870_s9 + $0x10] sm:$0xf] }
 0x235   : > { %v1734_v22 = vpack.c.b16 %v1722_v13, %v1721_v59  ;;  %v2337_v42 = vunpack.c.l.b16 %v2214_v18  ;;  %v1842_v28 = vsel %vm3877_vm14, %v1840_v44, %v1841_v34  ;;  %v1567_v3 = vrot.slane %v1565_v14, 5  ;;  %v3114_v59 = vld [vmem:[%s3870_s9 + $0x24] sm:$0xff]  ;;  %v4305_v34 = vld [vmem:[%s3870_s9 + $0x14] sm:$0x1]  ;;  %v3060_v14 = vld [vmem:[%s3870_s9 + $0x6c] sm:$0xe] }
 0x236   : > { %v2224_v54 = vsel %vm3898_vm15, %v2219_v49, %v2223_v0  ;;  %v1898_v10 = vunpack.c.l.b16 %v1842_v28  ;;  %v1571_v32 = vshll.u32 %v4213_v61, 16  ;;  %v1575_v25 = vshrl.u32 %v4213_v61, 16 }
 0x237   : > { %v1755_v37 = vsel %vm1032_vm11, %v1734_v22, 0  ;;  %v2338_v38 = vunpack.c.l.b16 %v2224_v54  ;;  %v1568_v26 = vor.u32 %v1567_v3, %v1564_v16  ;;  %v1581_v30 = vshll.u32 %v4217_v33, 16  ;;  %v2902_v22 = vld [vmem:[%s3870_s9 + $0x18] sm:$0xf] }
 0x238   : > { %1773 = vmatpush.bf16.xpose.msrb.mxu0 %v1755_v37  ;;  %v1912_v40 = vpack.c.b16 %v1898_v10, %v1897_v21  ;;  %v1573_v43 = vrot.slane %v1571_v32, 5  ;;  %v1577_v45 = vrot.slane %v1575_v25, 4  ;;  %v2178_v48 = vshrl.u32 %v3025_v31, 16 }
 0x239   : > { %v2350_v61 = vpack.c.b16 %v2338_v38, %v2337_v42  ;;  %v1569_v47 = vrot.slane %v1568_v26, 4  ;;  %v1583_v41 = vrot.slane %v1581_v30, 5  ;;  %v2181_v53 = vshll.u32 %v3025_v31, 16 }
 0x23a   : > { %v1929_v33 = vsel %vm1032_vm11, %v1912_v40, 0  ;;  %v1578_v56 = vor.u32 %v1577_v45, %v1573_v43  ;;  %v2180_v57 = vrot.slane %v2178_v48, 4  ;;  %v2187_v58 = vshll.u32 %v4287_v39, 16 }
 0x23b   : > { %v2371_v62 = vsel %vm1032_vm11, %v2350_v61, 0  ;;  %1955 = vmatpush.bf16.xpose.msrb.mxu1 %v1929_v33  ;;  %v1574_v63 = vsel %vm3898_vm15, %v1569_v47, %v1573_v43  ;;  %v2183_v0 = vrot.slane %v2181_v53, 5  ;;  %v2191_v2 = vshrl.u32 %v4287_v39, 16 }
 0x23c   : > { %2389 = vmatpush.bf16.xpose.msrb.mxu3 %v2371_v62  ;;  %v1579_v11 = vrot.slane %v1578_v56, 4  ;;  %v1719_v17 = vunpack.c.l.b16 %v1574_v63  ;;  %v2189_v5 = vrot.slane %v2187_v58, 5  ;;  %v2197_v12 = vshll.u32 %v4290_v36, 16 }
 0x23d   : > { %v2184_v23 = vor.u32 %v2183_v0, %v2180_v57  ;;  %v2193_v13 = vrot.slane %v2191_v2, 4  ;;  %v2941_v15 = vrot.slane %v2933_v46, 9  ;;  %v1831_v44 = vrot.slane %v4293_v55, 5 }
 0x23e   : > { %v1584_v18 = vsel %vm3898_vm15, %v1579_v11, %v1583_v41  ;;  %v2199_v49 = vrot.slane %v2197_v12, 5  ;;  %v1834_v21 = vrot.slane %v4305_v34, 5  ;;  %v2057_v16 = vsel %vm1032_vm11, %v3114_v59, 0  ;;  %v3022_v41 = vld [vmem:[%s3870_s9 + $0x24] sm:$0xf] }
 0x23f   : > { %v1720_v42 = vunpack.c.l.b16 %v1584_v18  ;;  %v2185_v28 = vrot.slane %v2184_v23, 4  ;;  %v2194_v3 = vor.u32 %v2193_v13, %v2189_v5  ;;  %v1832_v31 = vsel %vm3877_vm14, %v2941_v15, %v1831_v44  ;;  %2083 = vmatpush.bf16.xpose.msrb.mxu2 %v2057_v16  ;;  %v4336_v11 = vld [vmem:[%s3870_s9 + $0x28] sm:$0xf]  ;;  %v4341_v13 = vld [vmem:[%s3870_s9 + $0x2c] sm:$0x1] }
 0x240   : > { %v1833_v54 = vrot.slane %v1831_v44, 4  ;;  %v1895_v10 = vunpack.c.l.b16 %v1832_v31  ;;  %v3068_v32 = vrot.slane %v3060_v14, 9  ;;  %v2496_v25 = vrot.slane %v4076_v4, 5  ;;  %v3059_v18 = vld [vmem:[%s3870_s9 + $0x60] sm:$0xe] }
 0x241   : > { %v1733_v37 = vpack.c.b16 %v1720_v42, %v1719_v17  ;;  %v2190_v38 = vsel %vm3898_vm15, %v2185_v28, %v2189_v5  ;;  %v2195_v26 = vrot.slane %v2194_v3, 4  ;;  %v1538_v30 = vshrl.u32 %v2902_v22, 16  ;;  %v3113_v17 = vld [vmem:[%s3870_s9 + $0x18] sm:$0xff] }
 0x242   : > { %v2335_v24 = vunpack.c.l.b16 %v2190_v38  ;;  %v1835_v40 = vsel %vm3877_vm14, %v1833_v54, %v1834_v21  ;;  %v2497_v43 = vsel %vm3877_vm14, %v3068_v32, %v2496_v25  ;;  %v2498_v45 = vrot.slane %v2496_v25, 4 }
 0x243   : > { %v1752_v48 = vsel %vm1032_vm11, %v1733_v37, 0  ;;  %v2200_v61 = vsel %vm3898_vm15, %v2195_v26, %v2199_v49  ;;  %v1896_v4 = vunpack.c.l.b16 %v1835_v40  ;;  %v2525_v47 = vunpack.c.l.b16 %v2497_v43 }
 0x244   : > { %1774 = vmatpush.bf16.xpose.msrb.mxu0 %v1752_v48  ;;  %v2336_v53 = vunpack.c.l.b16 %v2200_v61  ;;  %v2500_v33 = vsel %vm3877_vm14, %v2498_v45, %v2499_v7  ;;  %v1540_v56 = vrot.slane %v1538_v30, 4  ;;  %v1541_v57 = vshll.u32 %v2902_v22, 16  ;;  %v2899_v30 = vld [vmem:[%s3870_s9 + $0xc] sm:$0xf] }
 0x245   : > { %v1911_v58 = vpack.c.b16 %v1896_v4, %v1895_v10  ;;  %v2526_v46 = vunpack.c.l.b16 %v2500_v33  ;;  %v1547_v59 = vshll.u32 %v4251_v1, 16  ;;  %v1551_v62 = vshrl.u32 %v4251_v1, 16 }
 0x246   : > { %v2349_v63 = vpack.c.b16 %v2336_v53, %v2335_v24  ;;  %v1543_v0 = vrot.slane %v1541_v57, 5  ;;  %v1557_v2 = vshll.u32 %v4262_v52, 16  ;;  %v2154_v9 = vshrl.u32 %v3022_v41, 16  ;;  %v3111_v24 = vld [vmem:[#allocation2 + $0x50] sm:$0xff]  ;;  %v3121_v53 = vld [vmem:[#allocation2 + $0x60] sm:$0xff] }
 0x247   : > { %v1926_v7 = vsel %vm1032_vm11, %v1911_v58, 0  ;;  %v2534_v5 = vpack.c.b16 %v2526_v46, %v2525_v47  ;;  %v1549_v12 = vrot.slane %v1547_v59, 5  ;;  %v1553_v23 = vrot.slane %v1551_v62, 4 }
 0x248   : > { %v2368_v15 = vsel %vm1032_vm11, %v2349_v63, 0  ;;  %1956 = vmatpush.bf16.xpose.msrb.mxu1 %v1926_v7  ;;  %v1544_v1 = vor.u32 %v1543_v0, %v1540_v56  ;;  %v1559_v44 = vrot.slane %v1557_v2, 5  ;;  %v2156_v14 = vrot.slane %v2154_v9, 4  ;;  %v3019_v9 = vld [vmem:[%s3870_s9 + $0x18] sm:$0xf] }
 0x249   : > { %2390 = vmatpush.bf16.xpose.msrb.mxu3 %v2368_v15  ;;  %v4346_v52 = vsel %vm1032_vm11, %v2534_v5, 0  ;;  %v1554_v49 = vor.u32 %v1553_v23, %v1549_v12  ;;  %v2157_v21 = vshll.u32 %v3022_v41, 16  ;;  %v2163_v16 = vshll.u32 %v4336_v11, 16 }
 0x24a   : > { %v1545_v22 = vrot.slane %v1544_v1, 4  ;;  %v2167_v42 = vshrl.u32 %v4336_v11, 16  ;;  %v2173_v28 = vshll.u32 %v4341_v13, 16  ;;  %v2054_v3 = vsel %vm1032_vm11, %v3113_v17, 0  ;;  %v4370_v17 = vld [vmem:[%s3870_s9 + $0x1c] sm:$0xf] }
 0x24b   : > { %v1555_v31 = vrot.slane %v1554_v49, 4  ;;  %v2159_v54 = vrot.slane %v2157_v21, 5  ;;  %v2165_v10 = vrot.slane %v2163_v16, 5  ;;  %2084 = vmatpush.bf16.xpose.msrb.mxu2 %v2054_v3  ;;  %v3067_v32 = vrot.slane %v3059_v18, 9  ;;  %v4379_v49 = vld [vmem:[%s3870_s9 + $0x20] sm:$0x1] }
 0x24c   : > { %v1550_v25 = vsel %vm3898_vm15, %v1545_v22, %v1549_v12  ;;  %v2169_v37 = vrot.slane %v2167_v42, 4  ;;  %v2175_v38 = vrot.slane %v2173_v28, 5  ;;  %v2489_v26 = vrot.slane %v4120_v60, 5 }
 0x24d   : > { %v1560_v40 = vsel %vm3898_vm15, %v1555_v31, %v1559_v44  ;;  %v1717_v43 = vunpack.c.l.b16 %v1550_v25  ;;  %v2160_v45 = vor.u32 %v2159_v54, %v2156_v14  ;;  %v2492_v48 = vrot.slane %v4123_v35, 5  ;;  %v3058_v54 = vld [vmem:[%s3870_s9 + $0x54] sm:$0xe] }
 0x24e   : > { %v1718_v61 = vunpack.c.l.b16 %v1560_v40  ;;  %v2170_v4 = vor.u32 %v2169_v37, %v2165_v10  ;;  %v2490_v47 = vsel %vm3877_vm14, %v3067_v32, %v2489_v26  ;;  %v2491_v41 = vrot.slane %v2489_v26, 4 }
 0x24f   : > { %v2161_v33 = vrot.slane %v2160_v45, 4  ;;  %v2523_v60 = vunpack.c.l.b16 %v2490_v47  ;;  %v1514_v56 = vshrl.u32 %v2899_v30, 16  ;;  %v1517_v57 = vshll.u32 %v2899_v30, 16  ;;  %2957 = vmatmul.msk.bf16.vlgmr.msrb.gmra.mxu1 %vm1032_vm11, %v3111_v24  ;;  %v3057_v30 = vld [vmem:[%s3870_s9 + $0x48] sm:$0xe] }
 0x250   : > { %3171 = vmatpush.bf16.xpose.msra.mxu1 %v4346_v52  ;;  %v1732_v58 = vpack.c.b16 %v1718_v61, %v1717_v43  ;;  %v2171_v46 = vrot.slane %v2170_v4, 4  ;;  %v2493_v35 = vsel %vm3877_vm14, %v2491_v41, %v2492_v48  ;;  %v1523_v59 = vshll.u32 %v4293_v55, 16 }
 0x251   : > { %v2166_v62 = vsel %vm3898_vm15, %v2161_v33, %v2165_v10  ;;  %v2524_v63 = vunpack.c.l.b16 %v2493_v35  ;;  %v1516_v0 = vrot.slane %v1514_v56, 4  ;;  %v1519_v2 = vrot.slane %v1517_v57, 5 }
 0x252   : > { %v1749_v7 = vsel %vm1032_vm11, %v1732_v58, 0  ;;  %v2176_v5 = vsel %vm3898_vm15, %v2171_v46, %v2175_v38  ;;  %v2333_v12 = vunpack.c.l.b16 %v2166_v62  ;;  %v1525_v23 = vrot.slane %v1523_v59, 5  ;;  %3017 = vmatmul.msk.bf16.vlgmr.msrb.gmra.mxu2 %vm1032_vm11, %v3121_v53  ;;  %v3112_v62 = vld [vmem:[#allocation2 + $0x58] sm:$0xff] }
 0x253   : > { %1775 = vmatpush.bf16.xpose.msrb.mxu0 %v1749_v7  ;;  %v2334_v15 = vunpack.c.l.b16 %v2176_v5  ;;  %v2533_v1 = vpack.c.b16 %v2524_v63, %v2523_v60  ;;  %v1520_v44 = vor.u32 %v1519_v2, %v1516_v0  ;;  %v1527_v14 = vshrl.u32 %v4293_v55, 16 }
 0x254   : > { %v1533_v18 = vshll.u32 %v4305_v34, 16  ;;  %v2130_v21 = vshrl.u32 %v3019_v9, 16  ;;  %v2133_v16 = vshll.u32 %v3019_v9, 16  ;;  %v2139_v22 = vshll.u32 %v4370_v17, 16 }
 0x255   : > { %v2348_v42 = vpack.c.b16 %v2334_v15, %v2333_v12  ;;  %v4383_v28 = vsel %vm1032_vm11, %v2533_v1, 0  ;;  %v1521_v3 = vrot.slane %v1520_v44, 4  ;;  %v1529_v31 = vrot.slane %v1527_v14, 4  ;;  %v3122_v12 = vld [vmem:[#allocation2 + $0x68] sm:$0xff] }
 0x256   : > { %v1535_v10 = vrot.slane %v1533_v18, 5  ;;  %v2132_v55 = vrot.slane %v2130_v21, 4  ;;  %v2135_v32 = vrot.slane %v2133_v16, 5  ;;  %v2141_v34 = vrot.slane %v2139_v22, 5 }
 0x257   : > { %v2365_v25 = vsel %vm1032_vm11, %v2348_v42, 0  ;;  %v1526_v37 = vsel %vm3898_vm15, %v1521_v3, %v1525_v23  ;;  %v1530_v38 = vor.u32 %v1529_v31, %v1525_v23  ;;  %v2143_v26 = vshrl.u32 %v4370_v17, 16  ;;  %v3056_v23 = vld [vmem:[%s3870_s9 + $0x3c] sm:$0xe] }
 0x258   : > { %3172 = vmatpush.bf16.xpose.msra.mxu1 %v4383_v28  ;;  %2391 = vmatpush.bf16.xpose.msrb.mxu3 %v2365_v25  ;;  %v1715_v24 = vunpack.c.l.b16 %v1526_v37  ;;  %v2136_v40 = vor.u32 %v2135_v32, %v2132_v55  ;;  %v2149_v43 = vshll.u32 %v4379_v49, 16  ;;  %v3066_v45 = vrot.slane %v3058_v54, 9  ;;  %v3109_v54 = vld [vmem:[#allocation2 + $0x40] sm:$0xff] }
 0x259   : > { %v1531_v48 = vrot.slane %v1530_v38, 4  ;;  %v2145_v61 = vrot.slane %v2143_v26, 4  ;;  %v2482_v4 = vrot.slane %v4159_v6, 5  ;;  %v2485_v47 = vrot.slane %v4164_v51, 5 }
 0x25a   : > { %v2137_v41 = vrot.slane %v2136_v40, 4  ;;  %v2151_v53 = vrot.slane %v2149_v43, 5  ;;  %v3065_v33 = vrot.slane %v3057_v30, 9  ;;  %v2475_v60 = vrot.slane %v4203_v50, 5 }
 0x25b   : > { %v1536_v56 = vsel %vm3898_vm15, %v1531_v48, %v1535_v10  ;;  %v2146_v57 = vor.u32 %v2145_v61, %v2141_v34  ;;  %v2483_v58 = vsel %vm3877_vm14, %v3066_v45, %v2482_v4  ;;  %v2484_v46 = vrot.slane %v2482_v4, 4  ;;  %v3054_v48 = vld [vmem:[%s3870_s9 + $0x24] sm:$0xe] }
 0x25c   : > { %v1716_v35 = vunpack.c.l.b16 %v1536_v56  ;;  %v2142_v6 = vsel %vm3898_vm15, %v2137_v41, %v2141_v34  ;;  %v2521_v59 = vunpack.c.l.b16 %v2483_v58  ;;  %v2476_v51 = vsel %vm3877_vm14, %v3065_v33, %v2475_v60  ;;  %v3055_v34 = vld [vmem:[%s3870_s9 + $0x30] sm:$0xe]  ;;  %v3124_v58 = vld [vmem:[#allocation2 + $0x78] sm:$0xff] }
 0x25d   : > { %v2147_v63 = vrot.slane %v2146_v57, 4  ;;  %v2486_v50 = vsel %vm3877_vm14, %v2484_v46, %v2485_v47  ;;  %v2477_v0 = vrot.slane %v2475_v60, 4  ;;  %v2331_v9 = vunpack.c.l.b16 %v2142_v6  ;;  %v3053_v57 = vld [vmem:[%s3870_s9 + $0x18] sm:$0xe]  ;;  %s3081_s9 = sshll.u32 %s2631_s21, 3  ;;  %s3281_s21 = scalar_lea.hbm %s4526_s7, 128 }
 0x25e   : > { %v1731_v2 = vpack.c.b16 %v1716_v35, %v1715_v24  ;;  %v2522_v7 = vunpack.c.l.b16 %v2486_v50  ;;  %v2478_v5 = vrot.slane %v4207_v19, 5  ;;  %v2519_v1 = vunpack.c.l.b16 %v2476_v51  ;;  %s2633_s16 = scalar_lea.hbm %s4526_s7, %s3081_s9 }
 0x25f   : > { %v2152_v15 = vsel %vm3898_vm15, %v2147_v63, %v2151_v53  ;;  %v2468_v44 = vrot.slane %v4241_v20, 5  ;;  %2958 = vmatmul.msk.bf16.gmra.mxu1 %vm1032_vm11, %v3112_v62  ;;  %v3064_v19 = vrot.slane %v3056_v23, 9  ;;  %v2471_v8 = vrot.slane %v4247_v29, 5  ;;  %v3110_v53 = vld [vmem:[#allocation2 + $0x48] sm:$0xff]  ;;  %s2636_s0 = sshll.u32 %s2633_s16, 4  ;;  %s2637_s0 = int_to_ptr.hbm [resolvable:$true] %s2636_s0 }
 0x260   : > { %v1746_v14 = vsel %vm1032_vm11, %v1731_v2, 0  ;;  %v2332_v18 = vunpack.c.l.b16 %v2152_v15  ;;  %v2532_v21 = vpack.c.b16 %v2522_v7, %v2521_v59  ;;  %v2479_v16 = vsel %vm3877_vm14, %v2477_v0, %v2478_v5  ;;  %v2588_v7 = vld [vmem:[%s4525_s6] sm:$0xff]  ;;  %v2589_v23 = vld [vmem:[%s4525_s6 + $0x8] sm:$0xff]  ;;  %s3275_s17 = sshra.s32 %s2637_s0, 4  ;;  %s3276_s17 = int_to_ptr.hbm [resolvable:$true] %s3275_s17 }
 0x261   : > { %1776 = vmatpush.bf16.xpose.msrb.mxu0 %v1746_v14  ;;  %v2520_v22 = vunpack.c.l.b16 %v2479_v16  ;;  %v2470_v42 = vrot.slane %v2468_v44, 4  ;;  %v2469_v55 = vsel %vm3877_vm14, %v3064_v19, %v2468_v44  ;;  %v2461_v29 = vrot.slane %v4287_v39, 5  ;;  %v3126_v15 = vld [vmem:[#allocation2 + $0x88] sm:$0xff]  ;;  %s3277_s18 = scalar_lea.hbm %s3276_s17, 32  ;;  %p3282_p4 = scmp.lt.s32.totalorder %s3276_s17, %s4526_s7 }
 0x262   : > { %v2347_v3 = vpack.c.b16 %v2332_v18, %v2331_v9  ;;  %v2557_v20 = vsel %vm1032_vm11, %v2532_v21, 0  ;;  %3018 = vmatmul.msk.bf16.gmra.mxu2 %vm1032_vm11, %v3122_v12  ;;  %v2517_v37 = vunpack.c.l.b16 %v2469_v55  ;;  %v3063_v26 = vrot.slane %v3055_v34, 9  ;;  %v2590_v9 = vld [vmem:[%s4525_s6 + $0x10] sm:$0xff]  ;;  %v2591_v12 = vld [vmem:[%s4525_s6 + $0x18] sm:$0xff]  ;;  %p3278_p0 = scmp.ne.s32.totalorder %s3276_s17, %s3277_s18  ;;  %p3283_p5 = scmp.lt.s32.totalorder %s3281_s21, %s3277_s18 }
 0x263   : > { %3173 = vmatpush.bf16.xpose.msra.mxu1 %v2557_v20  ;;  %v2531_v10 = vpack.c.b16 %v2520_v22, %v2519_v1  ;;  %v2472_v32 = vsel %vm3877_vm14, %v2470_v42, %v2471_v8  ;;  %v2463_v30 = vrot.slane %v2461_v29, 4  ;;  %v2464_v24 = vrot.slane %v4290_v36, 5  ;;  %v3125_v1 = vld [vmem:[#allocation2 + $0x80] sm:$0xff] }
 0x264   : > { %v2362_v31 = vsel %vm1032_vm11, %v2347_v3, 0  ;;  %v2518_v38 = vunpack.c.l.b16 %v2472_v32  ;;  %v2462_v39 = vsel %vm3877_vm14, %v3063_v26, %v2461_v29  ;;  %v2454_v45 = vrot.slane %v4336_v11, 5  ;;  %p3279_p1 = pnand %p3278_p0, %p3452_p3  ;;  %p3284_p6 = por %p3283_p5, %p3282_p4 }
 0x265   : > { %2392 = vmatpush.bf16.xpose.msrb.mxu3 %v2362_v31  ;;  %v2554_v25 = vsel %vm1032_vm11, %v2531_v10, 0  ;;  %v2465_v43 = vsel %vm3877_vm14, %v2463_v30, %v2464_v24  ;;  %v2515_v4 = vunpack.c.l.b16 %v2462_v39  ;;  %v3062_v47 = vrot.slane %v3054_v48, 9 }
 0x266   : > { %v2530_v40 = vpack.c.b16 %v2518_v38, %v2517_v37  ;;  %v2516_v36 = vunpack.c.l.b16 %v2465_v43  ;;  %v2457_v41 = vrot.slane %v4341_v13, 5  ;;  %v2447_v11 = vrot.slane %v4370_v17, 5  ;;  %p3280_p2 = pneg %p3279_p1 }
 0x267   : > { %v2455_v60 = vsel %vm3877_vm14, %v3062_v47, %v2454_v45  ;;  %v3061_v6 = vrot.slane %v3053_v57, 9  ;;  %v2450_v51 = vrot.slane %v4379_v49, 5  ;;  %v3357_v49 = vmov 0  }
 0x268   : > { %2931 = vmatmul.msk.bf16.vlgmr.msrb.gmra.mxu0 %vm1032_vm11, %v3109_v54  ;;  %v2551_v61 = vsel %vm1032_vm11, %v2530_v40, 0  ;;  %v2529_v33 = vpack.c.b16 %v2516_v36, %v2515_v4  ;;  %v2513_v35 = vunpack.c.l.b16 %v2455_v60  ;;  %v2449_v59 = vrot.slane %v2447_v11, 4  ;;  %3260 = vset.pattern.permute.xlu1 %v3357_v49  ;;  %p3285_p7 = pnand %p3284_p6, %p3280_p2 }
 0x269   : > { %2565 = vmatpush.bf16.xpose.msra.mxu0 %v4346_v52  ;;  %v3123_v52 = vld [vmem:[#allocation2 + $0x70] sm:$0xff]  ;;  %v2448_v17 = vsel %vm3877_vm14, %v3061_v6, %v2447_v11  ;;  %2604 = vperm.xlu1 %3260, %v2590_v9  }
 0x26a   : > { %v2548_v46 = vsel %vm1032_vm11, %v2529_v33, 0  ;;  %v2451_v63 = vsel %vm3877_vm14, %v2449_v59, %v2450_v51  ;;  %v2511_v0 = vunpack.c.l.b16 %v2448_v17  ;;  %3259 = vset.pattern.permute.xlu0 %v3357_v49 }
 0x26b   : > { %3174 = vmatpush.bf16.xpose.msra.mxu1 %v2554_v25  ;;  %v2512_v2 = vunpack.c.l.b16 %v2451_v63  ;;  %2594 = vperm.xlu0 %3259, %v2588_v7  }
 0x26c   : > { %3051 = vmatmul.msk.bf16.vlgmr.msrb.gmra.mxu3 %vm1032_vm11, %v3123_v52 }
 0x26d   : > { %v2527_v5 = vpack.c.b16 %v2512_v2, %v2511_v0 }
 0x26f   : > { %v2542_v27 = vsel %vm1032_vm11, %v2527_v5, 0 }
 0x271   : > { %2566 = vmatpush.bf16.xpose.msra.mxu0 %v4383_v28  ;;  %v2456_v28 = vrot.slane %v2454_v45, 4  ;;  %2609 = vperm.xlu1 %3260, %v2591_v12  }
 0x273   : > { %3175 = vmatpush.bf16.xpose.msra.mxu1 %v2551_v61  ;;  %v2458_v56 = vsel %vm3877_vm14, %v2456_v28, %v2457_v41  ;;  %2599 = vperm.xlu0 %3259, %v2589_v23  }
 0x274   : > { %v2514_v13 = vunpack.c.l.b16 %v2458_v56 }
 0x276   : > { %v2528_v62 = vpack.c.b16 %v2514_v13, %v2513_v35 }
 0x278   : > { %2932 = vmatmul.msk.bf16.gmra.mxu0 %vm1032_vm11, %v3110_v53  ;;  %v2545_v50 = vsel %vm1032_vm11, %v2528_v62, 0 }
 0x279   : > { %2567 = vmatpush.bf16.xpose.msra.mxu0 %v2557_v20 }
 0x27b   : > { %3176 = vmatpush.bf16.xpose.msra.mxu1 %v2548_v46 }
 0x27c   : > { %3052 = vmatmul.msk.bf16.gmra.mxu3 %vm1032_vm11, %v3124_v58 }
 0x281   : > { %2568 = vmatpush.bf16.xpose.msra.mxu0 %v2554_v25 }
 0x283   : > { %3177 = vmatpush.bf16.xpose.msra.mxu1 %v2545_v50 }
 0x285   : > { %v1072_v44 = vpop.f32.mrf.mxu0 }
 0x289   : > { %2569 = vmatpush.bf16.xpose.msra.mxu0 %v2551_v61  ;;  %v1342_v18 = vpop.f32.mrf.mxu2 }
 0x28b   : > { %3178 = vmatpush.bf16.xpose.msra.mxu1 %v2542_v27  ;;  %v1470_v22 = vpop.f32.mrf.mxu3 }
 0x28d   : > { %v1074_v21 = vpop.f32.mrf.mxu0 }
 0x290   : > { %v1171_v14 = vpop.f32.mrf.mxu1 }
 0x291   : > { %2570 = vmatpush.bf16.xpose.msra.mxu0 %v2548_v46  ;;  %v1344_v19 = vpop.f32.mrf.mxu2  ;;  %v1172_v36 = vadd.f32 %v1171_v14, %v1072_v44 }
 0x292   : > { %3078 = vmatmul.msk.bf16.vlgmr.msra.gmra.mxu1 %vm1032_vm11, %v3126_v15 }
 0x293   : > { %v1472_v3 = vpop.f32.mrf.mxu3  ;;  %v1352_v60 = vadd.f32 %v1342_v18, %v1172_v36 }
 0x295   : > { %v1480_v58 = vadd.f32 %v1470_v22, %v1352_v60 }
 0x298   : > { %v1173_v16 = vpop.f32.mrf.mxu1 }
 0x299   : > { %2571 = vmatpush.bf16.xpose.msra.mxu0 %v2545_v50  ;;  %v1174_v6 = vadd.f32 %v1173_v16, %v1074_v21 }
 0x29b   : > { %v1353_v0 = vadd.f32 %v1344_v19, %v1174_v6 }
 0x29d   : > { %v1481_v7 = vadd.f32 %v1472_v3, %v1353_v0 }
 0x2a0   : > { %v1077_v42 = vpop.f32.mrf.mxu0 }
 0x2a1   : > { %2572 = vmatpush.bf16.xpose.msra.mxu0 %v2542_v27 }
 0x2a5   : > { %v1347_v20 = vpop.f32.mrf.mxu2  ;;  %v1475_v10 = vpop.f32.mrf.mxu3 }
 0x2a8   : > { %3077 = vmatmul.msk.bf16.vlgmr.msra.gmra.mxu0 %vm1032_vm11, %v3125_v1  ;;  %v1079_v31 = vpop.f32.mrf.mxu0 }
 0x2ad   : > { %v1176_v8 = vpop.f32.mrf.mxu1  ;;  %v1349_v55 = vpop.f32.mrf.mxu2 }
 0x2ae   : > { %v1477_v34 = vpop.f32.mrf.mxu3  ;;  %v1177_v26 = vadd.f32 %v1176_v8, %v1077_v42 }
 0x2b0   : > { %v1354_v30 = vadd.f32 %v1347_v20, %v1177_v26 }
 0x2b2   : > { %v1482_v43 = vadd.f32 %v1475_v10, %v1354_v30 }
 0x2b5   : > { %v1178_v54 = vpop.f32.mrf.mxu1 }
 0x2b6   : > { %v1179_v48 = vadd.f32 %v1178_v54, %v1079_v31 }
 0x2b8   : > { %v1355_v4 = vadd.f32 %v1349_v55, %v1179_v48 }
 0x2ba   : > { %v1483_v33 = vadd.f32 %v1477_v34, %v1355_v4 }
 0x2cc   : > { %v1958_v29 = vpop.f32.mrf.mxu1 }
 0x2d4   : > { %v1960_v37 = vpop.f32.mrf.mxu1 }
 0x2d5   : > { %v2086_v52 = vpop.f32.mrf.mxu2 }
 0x2db   : > { %v2605_v46 = vpop.permute.xlu1 %2604 }
 0x2dc   : > { %v1963_v39 = vpop.f32.mrf.mxu1 }
 0x2dd   : > { %v2088_v24 = vpop.f32.mrf.mxu2  ;;  %v2595_v18 = vpop.permute.xlu0 %2594 }
 0x2e3   : > { %v2610_v27 = vpop.permute.xlu1 %2609 }
 0x2e4   : > { %v1965_v53 = vpop.f32.mrf.mxu1 }
 0x2e5   : > { %v1778_v32 = vpop.f32.mrf.mxu0  ;;  %v2091_v47 = vpop.f32.mrf.mxu2 }
 0x2e6   : > { %v1788_v17 = vadd.f32 %v1778_v32, %v1480_v58  ;;  %v2600_v20 = vpop.permute.xlu0 %2599 }
 0x2e8   : > { %v1968_v9 = vadd.f32 %v1958_v29, %v1788_v17 }
 0x2ea   : > { %v2096_v23 = vadd.f32 %v2086_v52, %v1968_v9 }
 0x2ed   : > { %v1780_v25 = vpop.f32.mrf.mxu0  ;;  %v2093_v59 = vpop.f32.mrf.mxu2 }
 0x2ee   : > { %v1789_v15 = vadd.f32 %v1780_v25, %v1481_v7 }
 0x2ef   : > { %v2394_v38 = vpop.f32.mrf.mxu3 }
 0x2f0   : > { %v2404_v44 = vadd.f32 %v2394_v38, %v2096_v23  ;;  %v1969_v14 = vadd.f32 %v1960_v37, %v1789_v15 }
 0x2f2   : > { %v2097_v22 = vadd.f32 %v2088_v24, %v1969_v14 }
 0x2f5   : > { %v1783_v40 = vpop.f32.mrf.mxu0 }
 0x2f6   : > { %v1790_v61 = vadd.f32 %v1783_v40, %v1482_v43 }
 0x2f7   : > { %v2396_v45 = vpop.f32.mrf.mxu3 }
 0x2f8   : > { %v1970_v28 = vadd.f32 %v1963_v39, %v1790_v61  ;;  %v2405_v42 = vadd.f32 %v2396_v45, %v2097_v22 }
 0x2fa   : > { %v2098_v11 = vadd.f32 %v2091_v47, %v1970_v28 }
 0x2fd   : > { %v1785_v41 = vpop.f32.mrf.mxu0 }
 0x2fe   : > { %v1791_v57 = vadd.f32 %v1785_v41, %v1483_v33 }
 0x2ff   : > { %v2399_v56 = vpop.f32.mrf.mxu3 }
 0x300   : > { %v2406_v35 = vadd.f32 %v2399_v56, %v2098_v11  ;;  %v1971_v13 = vadd.f32 %v1965_v53, %v1791_v57 }
 0x302   : > { %v2099_v63 = vadd.f32 %v2093_v59, %v1971_v13 }
 0x307   : > { %v2401_v2 = vpop.f32.mrf.mxu3 }
 0x308   : > { %v2407_v49 = vadd.f32 %v2401_v2, %v2099_v63 }
 0x30f   : > { %v2579_v51 = vpop.f32.mrf.mxu1 }
 0x310   : > { %v2586_v62 = vadd.f32 %v2579_v51, %v2406_v35 }
 0x312   : > { %v2614_v50 = vadd.f32 %v2605_v46, %v2586_v62 }
 0x314   : > { %2618 = vst [vmem:[%s3482_s13 + $0x10] sm:$0xff] %v2614_v50 }
 0x317   : > { %v2581_v5 = vpop.f32.mrf.mxu1 }
 0x318   : > { %v2587_v12 = vadd.f32 %v2581_v5, %v2407_v49 }
 0x31a   : > { %v2615_v1 = vadd.f32 %v2610_v27, %v2587_v12 }
 0x31c   : > { %2619 = vst [vmem:[%s3482_s13 + $0x18] sm:$0xff] %v2615_v1 }
 0x325   : > { %v2574_v21 = vpop.f32.mrf.mxu0 }
 0x326   : > { %v2584_v16 = vadd.f32 %v2574_v21, %v2404_v44 }
 0x328   : > { %v2612_v19 = vadd.f32 %v2595_v18, %v2584_v16 }
 0x32a   : > { %2616 = vst [vmem:[%s3482_s13] sm:$0xff] %v2612_v19 }
 0x32d   : > { %v2576_v8 = vpop.f32.mrf.mxu0 }
 0x32e   : > { %v2585_v3 = vadd.f32 %v2576_v8, %v2405_v42 }
 0x330   : > { %v2613_v31 = vadd.f32 %v2600_v20, %v2585_v3 }
 0x332   : > { %2617 = vst [vmem:[%s3482_s13 + $0x8] sm:$0xff] %v2613_v31 }
 0x333   : > { %3288 = shalt.err (!%p3285_p7)
}
 0x334   : > { %s3358_s13 = smov 128   ;;  %s3359_s10 = smov 256  }
 0x335   : > { %s3360_s16 = smov 8  }
 0x336   : > { %3180 = dma.vmem_to_hbm [thread:$0]  (%p3452_p3), %s2635_s28, 512, %s2637_s0, %s2621_s20, %s3358_s13, %s3359_s10, %s3360_s16  }
 0x337 PF: > { %p3186_p9 = scmp.ge.s32.totalorder %s3355_s8, 2  ;;  %s2651_s27 = sand.u32 1, %s3327_s24  }
 0x338   : > { %s2652_s17 = scalar_lea.sflag [#allocation4], %s2651_s27 }
 0x339   : > { %p3183_p10 = pnand %p3186_p9, %p3461_p8 }
 0x33b   : > { %p3184_p11 = pneg %p3183_p10 }
 0x33d   : > { %3322 = dma.done.wait (%p3184_p11), %s2652_s17, 512  }
 0x33e   : > { %3324 = vsyncadd (%p3184_p11), %s2652_s17, 4294966784  ;;  %s20_s8 = sadd.s32 1, %s3355_s8   ;;  %s4539_s14 = sld [smem:[#allocation6_spill]] }
 0x33f   : > { %p17_p12 = scmp.ge.s32.totalorder %s20_s8, 6   ;;  %s4540_s24 = smov %s3331_s25 }
 0x340   : > { %s4541_s25 = smov %s3335_s26  ;;  %s4542_s26 = smov %s3470_s19 }
 0x341   : > { %s4543_s27 = smov %s3347_s29  ;;  %s4544_s28 = smov %s3351_s30 }
 0x342   : > { %s4545_s29 = smov %s4548_s11  ;;  %19 = sbr.rel (!%p17_p12) target bundleno = 7 (0x7), region = 114 }
 0x344   : > { %s4546_s30 = smov %s4539_s14 }
 0x347   :  { %2658 = vsyncpa [#allocation4], 1 }
 0x348   :  { %2660 = vsyncpa [#allocation4 + $0x1], 1 }

</bundles_post_ra>
